<compile_context>
chip_gen: v7x
topology: tpu7x:2x2x1
jax: 0.10.0
libtpu: 0.0.40
codegen_flags: <defaults>
</compile_context>

<pallas_src>
import jax
import jax.numpy as jnp
from jax.experimental import pallas as pl
from jax.experimental.pallas import tpu as pltpu

HIDDEN = 100          # logical feature width (nn.Linear(100, 100))
PAD_D = 128           # lane-aligned padded feature width
SUBLANE = 16          # bf16 packed-sublane multiple (also satisfies the f32 8-row rule)
NUM_LAYERS = 8
# ReLU after each of the 8 original linears (matching the PyTorch forward):
RELU_AFTER = (False, True, True, False, True, True, False, False)
# Consecutive linears with no ReLU between them are composed into one matmul:
FUSE_GROUPS = ((0, 1), (2,), (3, 4), (5,), (6, 7))
FUSED_RELU = tuple(RELU_AFTER[g[-1]] for g in FUSE_GROUPS)   # (T, T, T, T, F)
NUM_FUSED = len(FUSE_GROUPS)                                  # 5 matmuls in-kernel


def _round_up(x, m):
    return ((x + m - 1) // m) * m


def composite_kernel(x_ref, w_ref, b_ref, o_ref):
    # x_ref: (tb, PAD_D)                  bf16 activation tile (padded lanes are exact 0)
    # w_ref: (NUM_FUSED, PAD_D, PAD_D)    bf16 fused weights, (in, out) layout, VMEM-resident
    # b_ref: (NUM_FUSED, 1, PAD_D)        f32 fused biases, VMEM-resident
    # o_ref: (tb, HIDDEN)                 f32 output tile (full-minor-dim block, masked store)
    h = x_ref[...]
    acc = None
    for i in range(NUM_FUSED):                       # statically unrolled 5-matmul chain
        acc = jnp.dot(h, w_ref[i], preferred_element_type=jnp.float32)   # bf16 MXU, f32 acc
        acc = acc + b_ref[i]                         # f32 bias add (broadcast (1,128))
        if FUSED_RELU[i]:
            acc = jnp.maximum(acc, 0.0)              # f32 ReLU on the VPU
        if i < NUM_FUSED - 1:
            h = acc.astype(jnp.bfloat16)             # narrow only for the next matmul
    o_ref[...] = acc[:, : o_ref.shape[1]].astype(o_ref.dtype)


def prepare_params(weights, biases):
    """One-time parameter prep (call at init, NOT per forward).

    weights: (8, 100, 100) f32 in (in, out) layout; biases: (8, 100) f32.
    Returns (w_p, b_p): fused (5, 128, 128) bf16 weights and (5, 1, 128) f32 biases.
    """
    ws, bs = [], []
    for group in FUSE_GROUPS:
        w = weights[group[0]].astype(jnp.float32)
        b = biases[group[0]].astype(jnp.float32)
        for j in group[1:]:                          # compose ReLU-free pairs in f32
            wj = weights[j].astype(jnp.float32)
            b = b @ wj + biases[j].astype(jnp.float32)
            w = w @ wj
        ws.append(w)
        bs.append(b)
    w_f = jnp.stack(ws)                              # (5, 100, 100)
    b_f = jnp.stack(bs)                              # (5, 100)
    # Zero-pad features 100 -> 128: zero weight rows/cols + zero bias pad keep the
    # padded lanes exactly zero through the whole chain.
    w_p = jnp.pad(w_f, ((0, 0), (0, PAD_D - HIDDEN), (0, PAD_D - HIDDEN))).astype(jnp.bfloat16)
    b_p = jnp.pad(b_f, ((0, 0), (0, PAD_D - HIDDEN))).astype(jnp.float32)
    b_p = b_p.reshape(NUM_FUSED, 1, PAD_D)
    return w_p, b_p


def _pallas_forward(x_p, w_p, b_p, *, tb, single_buffer_params):
    B_pad = x_p.shape[0]
    grid = B_pad // tb
    const3 = lambda i: (0, 0, 0)                     # params VMEM-resident across the grid
    if single_buffer_params:
        # Constant index_map -> a single one-time weight DMA, no second parameter buffer.
        w_spec = pl.BlockSpec(w_p.shape, const3, pipeline_mode=pl.Buffered(1))
        b_spec = pl.BlockSpec(b_p.shape, const3, pipeline_mode=pl.Buffered(1))
    else:
        w_spec = pl.BlockSpec(w_p.shape, const3)
        b_spec = pl.BlockSpec(b_p.shape, const3)
    return pl.pallas_call(
        composite_kernel,
        out_shape=jax.ShapeDtypeStruct((B_pad, HIDDEN), jnp.float32),
        grid_spec=pltpu.PrefetchScalarGridSpec(
            num_scalar_prefetch=0,
            grid=(grid,),
            in_specs=[
                pl.BlockSpec((tb, PAD_D), lambda i: (i, 0)),
                w_spec,
                b_spec,
            ],
            out_specs=pl.BlockSpec((tb, HIDDEN), lambda i: (i, 0)),
        ),
        compiler_params=pltpu.CompilerParams(dimension_semantics=("parallel",)),
    )(x_p, w_p, b_p)


def composite_model(x, w_p, b_p, *, tile_b=1024):
    """x: (B, 100) f32; (w_p, b_p) from prepare_params(). Returns (B, 100) f32."""
    B, D = x.shape
    assert D == HIDDEN
    assert w_p.shape == (NUM_FUSED, PAD_D, PAD_D)
    assert b_p.shape == (NUM_FUSED, 1, PAD_D)

    # Batch tile: as large as possible (amortize ~0.35us per-grid-step overhead), but
    # capped at ceil(B/2) (rounded to the sublane multiple) so medium batches still get
    # >= 2 grid steps for v7x's two TensorCores.
    tile_b = _round_up(tile_b, SUBLANE)
    half = -(-B // 2)
    tb = max(SUBLANE, min(tile_b, _round_up(half, SUBLANE)))
    B_pad = _round_up(B, tb)

    # Single fused pass over x: batch pad + feature pad (100 -> 128) + bf16 cast.
    # bf16 input halves the kernel's input DMA bytes; zero pads stay exactly zero.
    x_p = jnp.pad(x, ((0, B_pad - B), (0, PAD_D - HIDDEN))).astype(jnp.bfloat16)

    try:
        out = _pallas_forward(x_p, w_p, b_p, tb=tb, single_buffer_params=True)
    except Exception:
        # pl.Buffered(1) unsupported on this jax version -> default double-buffering
        # (parameters are only ~170 KiB, so the extra buffer is harmless).
        out = _pallas_forward(x_p, w_p, b_p, tb=tb, single_buffer_params=False)

    return out if B_pad == B else out[:B]


def _reference(x, weights, biases):
    """Pure-JAX f32 reference matching the PyTorch forward exactly (un-fused chain)."""
    h = x.astype(jnp.float32)
    for i in range(NUM_LAYERS):
        h = jnp.dot(h, weights[i], precision=jax.lax.Precision.HIGHEST) + biases[i]
        if RELU_AFTER[i]:
            h = jnp.maximum(h, 0.0)
    return h


if __name__ == "__main__":
    key = jax.random.PRNGKey(0)
    kx, kw, kb = jax.random.split(key, 3)

    # Small but non-trivial batch: not a tile multiple, exercises batch padding and the
    # 2-step parallel grid path.
    B = 200
    x = jax.random.normal(kx, (B, HIDDEN), dtype=jnp.float32)

    # Deterministic parameter init (uniform in +-1/sqrt(fan_in), like nn.Linear),
    # stored as (in, out) so forward is x @ W + b.
    bound = 1.0 / (HIDDEN ** 0.5)
    weights = jax.random.uniform(
        kw, (NUM_LAYERS, HIDDEN, HIDDEN), dtype=jnp.float32,
        minval=-bound, maxval=bound)
    biases = jax.random.uniform(
        kb, (NUM_LAYERS, HIDDEN), dtype=jnp.float32,
        minval=-bound, maxval=bound)

    # One-time parameter prep (fusion + padding + bf16 cast), hoisted out of the forward.
    w_p, b_p = prepare_params(weights, biases)
    w_p, b_p = jax.block_until_ready((w_p, b_p))

    out = composite_model(x, w_p, b_p)
    out = jax.block_until_ready(out)

    ref = _reference(x, weights, biases)
    assert out.shape == (B, HIDDEN)
    max_err = float(jnp.max(jnp.abs(out - ref)))
    assert jnp.allclose(out, ref, atol=2e-2, rtol=2e-2), (
        f"mismatch vs f32 reference (max abs err {max_err})")

    print("KERNEL_OK")
</pallas_src>

<mosaic_0001>
module attributes {stable_mosaic.version = 11 : i64} {
  func.func @composite_kernel(%arg0: i32, %arg1: memref<112x128xbf16, #tpu.memory_space<vmem>>, %arg2: memref<5x128x128xbf16, #tpu.memory_space<vmem>>, %arg3: memref<5x1x128xf32, #tpu.memory_space<vmem>>, %arg4: memref<112x100xf32, #tpu.memory_space<vmem>>) attributes {dimension_semantics = [#tpu.dimension_semantics<parallel>], iteration_bounds = array<i64: 2>, scalar_prefetch = 0 : i64, scratch_operands = 0 : i64, tpu.core_type = #tpu.core_type<tc>, window_params = [{transform_indices = @transform_0, window_bounds = array<i64: 112, 128>}, {pipeline_mode = #tpu.pipeline_mode<synchronous>, transform_indices = @transform_1, window_bounds = array<i64: 5, 128, 128>}, {pipeline_mode = #tpu.pipeline_mode<synchronous>, transform_indices = @transform_2, window_bounds = array<i64: 5, 1, 128>}, {transform_indices = @transform_3, window_bounds = array<i64: 112, 100>}]} {
    %c0 = arith.constant 0 : index
    %c0_0 = arith.constant 0 : index
    %0 = vector.load %arg1[%c0, %c0_0] : memref<112x128xbf16, #tpu.memory_space<vmem>>, vector<112x128xbf16>
    %c0_1 = arith.constant 0 : index
    %c0_2 = arith.constant 0 : index
    %c0_3 = arith.constant 0 : index
    %1 = vector.load %arg2[%c0_1, %c0_2, %c0_3] : memref<5x128x128xbf16, #tpu.memory_space<vmem>>, vector<1x128x128xbf16>
    %2 = vector.shape_cast %1 : vector<1x128x128xbf16> to vector<128x128xbf16>
    %cst = arith.constant dense<0.000000e+00> : vector<112x128xf32>
    %3 = tpu.matmul %0, %2, %cst {dimension_numbers = #tpu.dot_dimension_numbers<[1], [0], [0], [1], [0, 0, 1, 1], [], []>} : vector<112x128xbf16>, vector<128x128xbf16>, vector<112x128xf32> -> vector<112x128xf32>
    %c0_4 = arith.constant 0 : index
    %c0_5 = arith.constant 0 : index
    %c0_6 = arith.constant 0 : index
    %4 = vector.load %arg3[%c0_4, %c0_5, %c0_6] : memref<5x1x128xf32, #tpu.memory_space<vmem>>, vector<1x1x128xf32>
    %5 = vector.shape_cast %4 : vector<1x1x128xf32> to vector<1x128xf32>
    %6 = vector.broadcast %5 : vector<1x128xf32> to vector<112x128xf32>
    %7 = arith.addf %3, %6 : vector<112x128xf32>
    %cst_7 = arith.constant 0.000000e+00 : f32
    %8 = vector.broadcast %cst_7 : f32 to vector<112x128xf32>
    %9 = arith.maximumf %7, %8 : vector<112x128xf32>
    %10 = arith.truncf %9 : vector<112x128xf32> to vector<112x128xbf16>
    %c1 = arith.constant 1 : index
    %c0_8 = arith.constant 0 : index
    %c0_9 = arith.constant 0 : index
    %11 = vector.load %arg2[%c1, %c0_8, %c0_9] : memref<5x128x128xbf16, #tpu.memory_space<vmem>>, vector<1x128x128xbf16>
    %12 = vector.shape_cast %11 : vector<1x128x128xbf16> to vector<128x128xbf16>
    %cst_10 = arith.constant dense<0.000000e+00> : vector<112x128xf32>
    %13 = tpu.matmul %10, %12, %cst_10 {dimension_numbers = #tpu.dot_dimension_numbers<[1], [0], [0], [1], [0, 0, 1, 1], [], []>} : vector<112x128xbf16>, vector<128x128xbf16>, vector<112x128xf32> -> vector<112x128xf32>
    %c1_11 = arith.constant 1 : index
    %c0_12 = arith.constant 0 : index
    %c0_13 = arith.constant 0 : index
    %14 = vector.load %arg3[%c1_11, %c0_12, %c0_13] : memref<5x1x128xf32, #tpu.memory_space<vmem>>, vector<1x1x128xf32>
    %15 = vector.shape_cast %14 : vector<1x1x128xf32> to vector<1x128xf32>
    %16 = vector.broadcast %15 : vector<1x128xf32> to vector<112x128xf32>
    %17 = arith.addf %13, %16 : vector<112x128xf32>
    %cst_14 = arith.constant 0.000000e+00 : f32
    %18 = vector.broadcast %cst_14 : f32 to vector<112x128xf32>
    %19 = arith.maximumf %17, %18 : vector<112x128xf32>
    %20 = arith.truncf %19 : vector<112x128xf32> to vector<112x128xbf16>
    %c2 = arith.constant 2 : index
    %c0_15 = arith.constant 0 : index
    %c0_16 = arith.constant 0 : index
    %21 = vector.load %arg2[%c2, %c0_15, %c0_16] : memref<5x128x128xbf16, #tpu.memory_space<vmem>>, vector<1x128x128xbf16>
    %22 = vector.shape_cast %21 : vector<1x128x128xbf16> to vector<128x128xbf16>
    %cst_17 = arith.constant dense<0.000000e+00> : vector<112x128xf32>
    %23 = tpu.matmul %20, %22, %cst_17 {dimension_numbers = #tpu.dot_dimension_numbers<[1], [0], [0], [1], [0, 0, 1, 1], [], []>} : vector<112x128xbf16>, vector<128x128xbf16>, vector<112x128xf32> -> vector<112x128xf32>
    %c2_18 = arith.constant 2 : index
    %c0_19 = arith.constant 0 : index
    %c0_20 = arith.constant 0 : index
    %24 = vector.load %arg3[%c2_18, %c0_19, %c0_20] : memref<5x1x128xf32, #tpu.memory_space<vmem>>, vector<1x1x128xf32>
    %25 = vector.shape_cast %24 : vector<1x1x128xf32> to vector<1x128xf32>
    %26 = vector.broadcast %25 : vector<1x128xf32> to vector<112x128xf32>
    %27 = arith.addf %23, %26 : vector<112x128xf32>
    %cst_21 = arith.constant 0.000000e+00 : f32
    %28 = vector.broadcast %cst_21 : f32 to vector<112x128xf32>
    %29 = arith.maximumf %27, %28 : vector<112x128xf32>
    %30 = arith.truncf %29 : vector<112x128xf32> to vector<112x128xbf16>
    %c3 = arith.constant 3 : index
    %c0_22 = arith.constant 0 : index
    %c0_23 = arith.constant 0 : index
    %31 = vector.load %arg2[%c3, %c0_22, %c0_23] : memref<5x128x128xbf16, #tpu.memory_space<vmem>>, vector<1x128x128xbf16>
    %32 = vector.shape_cast %31 : vector<1x128x128xbf16> to vector<128x128xbf16>
    %cst_24 = arith.constant dense<0.000000e+00> : vector<112x128xf32>
    %33 = tpu.matmul %30, %32, %cst_24 {dimension_numbers = #tpu.dot_dimension_numbers<[1], [0], [0], [1], [0, 0, 1, 1], [], []>} : vector<112x128xbf16>, vector<128x128xbf16>, vector<112x128xf32> -> vector<112x128xf32>
    %c3_25 = arith.constant 3 : index
    %c0_26 = arith.constant 0 : index
    %c0_27 = arith.constant 0 : index
    %34 = vector.load %arg3[%c3_25, %c0_26, %c0_27] : memref<5x1x128xf32, #tpu.memory_space<vmem>>, vector<1x1x128xf32>
    %35 = vector.shape_cast %34 : vector<1x1x128xf32> to vector<1x128xf32>
    %36 = vector.broadcast %35 : vector<1x128xf32> to vector<112x128xf32>
    %37 = arith.addf %33, %36 : vector<112x128xf32>
    %cst_28 = arith.constant 0.000000e+00 : f32
    %38 = vector.broadcast %cst_28 : f32 to vector<112x128xf32>
    %39 = arith.maximumf %37, %38 : vector<112x128xf32>
    %40 = arith.truncf %39 : vector<112x128xf32> to vector<112x128xbf16>
    %c4 = arith.constant 4 : index
    %c0_29 = arith.constant 0 : index
    %c0_30 = arith.constant 0 : index
    %41 = vector.load %arg2[%c4, %c0_29, %c0_30] : memref<5x128x128xbf16, #tpu.memory_space<vmem>>, vector<1x128x128xbf16>
    %42 = vector.shape_cast %41 : vector<1x128x128xbf16> to vector<128x128xbf16>
    %cst_31 = arith.constant dense<0.000000e+00> : vector<112x128xf32>
    %43 = tpu.matmul %40, %42, %cst_31 {dimension_numbers = #tpu.dot_dimension_numbers<[1], [0], [0], [1], [0, 0, 1, 1], [], []>} : vector<112x128xbf16>, vector<128x128xbf16>, vector<112x128xf32> -> vector<112x128xf32>
    %c4_32 = arith.constant 4 : index
    %c0_33 = arith.constant 0 : index
    %c0_34 = arith.constant 0 : index
    %44 = vector.load %arg3[%c4_32, %c0_33, %c0_34] : memref<5x1x128xf32, #tpu.memory_space<vmem>>, vector<1x1x128xf32>
    %45 = vector.shape_cast %44 : vector<1x1x128xf32> to vector<1x128xf32>
    %46 = vector.broadcast %45 : vector<1x128xf32> to vector<112x128xf32>
    %47 = arith.addf %43, %46 : vector<112x128xf32>
    %48 = vector.extract_strided_slice %47 {offsets = [0, 0], sizes = [112, 100], strides = [1, 1]} : vector<112x128xf32> to vector<112x100xf32>
    %c0_35 = arith.constant 0 : index
    %c0_36 = arith.constant 0 : index
    %49 = vector.load %arg4[%c0_35, %c0_36] : memref<112x100xf32, #tpu.memory_space<vmem>>, vector<112x100xf32>
    tpu.vector_store %arg4[%c0_35, %c0_36], %48 {strides = array<i32>} : memref<112x100xf32, #tpu.memory_space<vmem>>, vector<112x100xf32>,
    return
  }
  func.func @transform_0(%arg0: i32) -> (i32, i32) {
    %c0_i32 = arith.constant 0 : i32
    %c0_i32_0 = arith.constant 0 : i32
    return %arg0, %c0_i32 : i32, i32
  }
  func.func @transform_1(%arg0: i32) -> (i32, i32, i32) {
    %c0_i32 = arith.constant 0 : i32
    %c0_i32_0 = arith.constant 0 : i32
    %c0_i32_1 = arith.constant 0 : i32
    %c0_i32_2 = arith.constant 0 : i32
    return %c0_i32, %c0_i32_0, %c0_i32_1 : i32, i32, i32
  }
  func.func @transform_2(%arg0: i32) -> (i32, i32, i32) {
    %c0_i32 = arith.constant 0 : i32
    %c0_i32_0 = arith.constant 0 : i32
    %c0_i32_1 = arith.constant 0 : i32
    %c0_i32_2 = arith.constant 0 : i32
    return %c0_i32, %c0_i32_0, %c0_i32_1 : i32, i32, i32
  }
  func.func @transform_3(%arg0: i32) -> (i32, i32) {
    %c0_i32 = arith.constant 0 : i32
    %c0_i32_0 = arith.constant 0 : i32
    return %arg0, %c0_i32 : i32, i32
  }
}

module attributes {stable_mosaic.version = 11 : i64} {
  func.func @composite_kernel(%arg0: i32, %arg1: memref<112x128xbf16, #tpu.memory_space<vmem>>, %arg2: memref<5x128x128xbf16, #tpu.memory_space<vmem>>, %arg3: memref<5x1x128xf32, #tpu.memory_space<vmem>>, %arg4: memref<112x100xf32, #tpu.memory_space<vmem>>) attributes {dimension_semantics = [#tpu.dimension_semantics<parallel>], iteration_bounds = array<i64: 2>, scalar_prefetch = 0 : i64, scratch_operands = 0 : i64, tpu.core_type = #tpu.core_type<tc>, window_params = [{transform_indices = @transform_0, window_bounds = array<i64: 112, 128>}, {pipeline_mode = #tpu.pipeline_mode<synchronous>, transform_indices = @transform_1, window_bounds = array<i64: 5, 128, 128>}, {pipeline_mode = #tpu.pipeline_mode<synchronous>, transform_indices = @transform_2, window_bounds = array<i64: 5, 1, 128>}, {transform_indices = @transform_3, window_bounds = array<i64: 112, 100>}]} {
    %c0 = arith.constant 0 : index
    %c0_0 = arith.constant 0 : index
    %0 = vector.load %arg1[%c0, %c0_0] : memref<112x128xbf16, #tpu.memory_space<vmem>>, vector<112x128xbf16>
    %c0_1 = arith.constant 0 : index
    %c0_2 = arith.constant 0 : index
    %c0_3 = arith.constant 0 : index
    %1 = vector.load %arg2[%c0_1, %c0_2, %c0_3] : memref<5x128x128xbf16, #tpu.memory_space<vmem>>, vector<1x128x128xbf16>
    %2 = vector.shape_cast %1 : vector<1x128x128xbf16> to vector<128x128xbf16>
    %cst = arith.constant dense<0.000000e+00> : vector<112x128xf32>
    %3 = tpu.matmul %0, %2, %cst {dimension_numbers = #tpu.dot_dimension_numbers<[1], [0], [0], [1], [0, 0, 1, 1], [], []>} : vector<112x128xbf16>, vector<128x128xbf16>, vector<112x128xf32> -> vector<112x128xf32>
    %c0_4 = arith.constant 0 : index
    %c0_5 = arith.constant 0 : index
    %c0_6 = arith.constant 0 : index
    %4 = vector.load %arg3[%c0_4, %c0_5, %c0_6] : memref<5x1x128xf32, #tpu.memory_space<vmem>>, vector<1x1x128xf32>
    %5 = vector.shape_cast %4 : vector<1x1x128xf32> to vector<1x128xf32>
    %6 = vector.broadcast %5 : vector<1x128xf32> to vector<112x128xf32>
    %7 = arith.addf %3, %6 : vector<112x128xf32>
    %cst_7 = arith.constant 0.000000e+00 : f32
    %8 = vector.broadcast %cst_7 : f32 to vector<112x128xf32>
    %9 = arith.maximumf %7, %8 : vector<112x128xf32>
    %10 = arith.truncf %9 : vector<112x128xf32> to vector<112x128xbf16>
    %c1 = arith.constant 1 : index
    %c0_8 = arith.constant 0 : index
    %c0_9 = arith.constant 0 : index
    %11 = vector.load %arg2[%c1, %c0_8, %c0_9] : memref<5x128x128xbf16, #tpu.memory_space<vmem>>, vector<1x128x128xbf16>
    %12 = vector.shape_cast %11 : vector<1x128x128xbf16> to vector<128x128xbf16>
    %cst_10 = arith.constant dense<0.000000e+00> : vector<112x128xf32>
    %13 = tpu.matmul %10, %12, %cst_10 {dimension_numbers = #tpu.dot_dimension_numbers<[1], [0], [0], [1], [0, 0, 1, 1], [], []>} : vector<112x128xbf16>, vector<128x128xbf16>, vector<112x128xf32> -> vector<112x128xf32>
    %c1_11 = arith.constant 1 : index
    %c0_12 = arith.constant 0 : index
    %c0_13 = arith.constant 0 : index
    %14 = vector.load %arg3[%c1_11, %c0_12, %c0_13] : memref<5x1x128xf32, #tpu.memory_space<vmem>>, vector<1x1x128xf32>
    %15 = vector.shape_cast %14 : vector<1x1x128xf32> to vector<1x128xf32>
    %16 = vector.broadcast %15 : vector<1x128xf32> to vector<112x128xf32>
    %17 = arith.addf %13, %16 : vector<112x128xf32>
    %cst_14 = arith.constant 0.000000e+00 : f32
    %18 = vector.broadcast %cst_14 : f32 to vector<112x128xf32>
    %19 = arith.maximumf %17, %18 : vector<112x128xf32>
    %20 = arith.truncf %19 : vector<112x128xf32> to vector<112x128xbf16>
    %c2 = arith.constant 2 : index
    %c0_15 = arith.constant 0 : index
    %c0_16 = arith.constant 0 : index
    %21 = vector.load %arg2[%c2, %c0_15, %c0_16] : memref<5x128x128xbf16, #tpu.memory_space<vmem>>, vector<1x128x128xbf16>
    %22 = vector.shape_cast %21 : vector<1x128x128xbf16> to vector<128x128xbf16>
    %cst_17 = arith.constant dense<0.000000e+00> : vector<112x128xf32>
    %23 = tpu.matmul %20, %22, %cst_17 {dimension_numbers = #tpu.dot_dimension_numbers<[1], [0], [0], [1], [0, 0, 1, 1], [], []>} : vector<112x128xbf16>, vector<128x128xbf16>, vector<112x128xf32> -> vector<112x128xf32>
    %c2_18 = arith.constant 2 : index
    %c0_19 = arith.constant 0 : index
    %c0_20 = arith.constant 0 : index
    %24 = vector.load %arg3[%c2_18, %c0_19, %c0_20] : memref<5x1x128xf32, #tpu.memory_space<vmem>>, vector<1x1x128xf32>
    %25 = vector.shape_cast %24 : vector<1x1x128xf32> to vector<1x128xf32>
    %26 = vector.broadcast %25 : vector<1x128xf32> to vector<112x128xf32>
    %27 = arith.addf %23, %26 : vector<112x128xf32>
    %cst_21 = arith.constant 0.000000e+00 : f32
    %28 = vector.broadcast %cst_21 : f32 to vector<112x128xf32>
    %29 = arith.maximumf %27, %28 : vector<112x128xf32>
    %30 = arith.truncf %29 : vector<112x128xf32> to vector<112x128xbf16>
    %c3 = arith.constant 3 : index
    %c0_22 = arith.constant 0 : index
    %c0_23 = arith.constant 0 : index
    %31 = vector.load %arg2[%c3, %c0_22, %c0_23] : memref<5x128x128xbf16, #tpu.memory_space<vmem>>, vector<1x128x128xbf16>
    %32 = vector.shape_cast %31 : vector<1x128x128xbf16> to vector<128x128xbf16>
    %cst_24 = arith.constant dense<0.000000e+00> : vector<112x128xf32>
    %33 = tpu.matmul %30, %32, %cst_24 {dimension_numbers = #tpu.dot_dimension_numbers<[1], [0], [0], [1], [0, 0, 1, 1], [], []>} : vector<112x128xbf16>, vector<128x128xbf16>, vector<112x128xf32> -> vector<112x128xf32>
    %c3_25 = arith.constant 3 : index
    %c0_26 = arith.constant 0 : index
    %c0_27 = arith.constant 0 : index
    %34 = vector.load %arg3[%c3_25, %c0_26, %c0_27] : memref<5x1x128xf32, #tpu.memory_space<vmem>>, vector<1x1x128xf32>
    %35 = vector.shape_cast %34 : vector<1x1x128xf32> to vector<1x128xf32>
    %36 = vector.broadcast %35 : vector<1x128xf32> to vector<112x128xf32>
    %37 = arith.addf %33, %36 : vector<112x128xf32>
    %cst_28 = arith.constant 0.000000e+00 : f32
    %38 = vector.broadcast %cst_28 : f32 to vector<112x128xf32>
    %39 = arith.maximumf %37, %38 : vector<112x128xf32>
    %40 = arith.truncf %39 : vector<112x128xf32> to vector<112x128xbf16>
    %c4 = arith.constant 4 : index
    %c0_29 = arith.constant 0 : index
    %c0_30 = arith.constant 0 : index
    %41 = vector.load %arg2[%c4, %c0_29, %c0_30] : memref<5x128x128xbf16, #tpu.memory_space<vmem>>, vector<1x128x128xbf16>
    %42 = vector.shape_cast %41 : vector<1x128x128xbf16> to vector<128x128xbf16>
    %cst_31 = arith.constant dense<0.000000e+00> : vector<112x128xf32>
    %43 = tpu.matmul %40, %42, %cst_31 {dimension_numbers = #tpu.dot_dimension_numbers<[1], [0], [0], [1], [0, 0, 1, 1], [], []>} : vector<112x128xbf16>, vector<128x128xbf16>, vector<112x128xf32> -> vector<112x128xf32>
    %c4_32 = arith.constant 4 : index
    %c0_33 = arith.constant 0 : index
    %c0_34 = arith.constant 0 : index
    %44 = vector.load %arg3[%c4_32, %c0_33, %c0_34] : memref<5x1x128xf32, #tpu.memory_space<vmem>>, vector<1x1x128xf32>
    %45 = vector.shape_cast %44 : vector<1x1x128xf32> to vector<1x128xf32>
    %46 = vector.broadcast %45 : vector<1x128xf32> to vector<112x128xf32>
    %47 = arith.addf %43, %46 : vector<112x128xf32>
    %48 = vector.extract_strided_slice %47 {offsets = [0, 0], sizes = [112, 100], strides = [1, 1]} : vector<112x128xf32> to vector<112x100xf32>
    %c0_35 = arith.constant 0 : index
    %c0_36 = arith.constant 0 : index
    %49 = vector.load %arg4[%c0_35, %c0_36] : memref<112x100xf32, #tpu.memory_space<vmem>>, vector<112x100xf32>
    tpu.vector_store %arg4[%c0_35, %c0_36], %48 {strides = array<i32>} : memref<112x100xf32, #tpu.memory_space<vmem>>, vector<112x100xf32>,
    return
  }
  func.func @transform_0(%arg0: i32) -> (i32, i32) {
    %c0_i32 = arith.constant 0 : i32
    %c0_i32_0 = arith.constant 0 : i32
    return %arg0, %c0_i32 : i32, i32
  }
  func.func @transform_1(%arg0: i32) -> (i32, i32, i32) {
    %c0_i32 = arith.constant 0 : i32
    %c0_i32_0 = arith.constant 0 : i32
    %c0_i32_1 = arith.constant 0 : i32
    %c0_i32_2 = arith.constant 0 : i32
    return %c0_i32, %c0_i32_0, %c0_i32_1 : i32, i32, i32
  }
  func.func @transform_2(%arg0: i32) -> (i32, i32, i32) {
    %c0_i32 = arith.constant 0 : i32
    %c0_i32_0 = arith.constant 0 : i32
    %c0_i32_1 = arith.constant 0 : i32
    %c0_i32_2 = arith.constant 0 : i32
    return %c0_i32, %c0_i32_0, %c0_i32_1 : i32, i32, i32
  }
  func.func @transform_3(%arg0: i32) -> (i32, i32) {
    %c0_i32 = arith.constant 0 : i32
    %c0_i32_0 = arith.constant 0 : i32
    return %arg0, %c0_i32 : i32, i32
  }
}

</mosaic_0001>

<bundles_post_ra>
// kernel: tpu_custom_call.1
= control target key start
LH: loop header
LB: loop body
LE: loop exit
PB: predicated region body
PF: predicated region fallthrough
CT: control target
= control target key end

     0   :  { %8 = vsyncpa [#allocation3], 0  ;;  %s2242_s0 = inlined_call_operand.hbm [shape: bf16[224,128], index: 0, kind: input, shape index: {}]   ;;  %s2243_s1 = inlined_call_operand.hbm [shape: bf16[5,128,128], index: 1, kind: input, shape index: {}]   ;;  %s2244_s2 = inlined_call_operand.vmem [shape: f32[5,1,128], index: 2, kind: input, shape index: {}]   ;;  %s2245_s3 = inlined_call_operand.vmem [shape: f32[224,100], index: 3, kind: output, shape index: {}]  }
   0x1   :  { %10 = vsyncpa [#allocation3 + $0x1], 0 }
   0x2   :  { %11 = vsyncpa [#allocation5], 0  ;;  %s1855_s12 = smov 0   ;;  %s1857_s13 = smov 0  }
   0x3   :  { %s1859_s14 = smov 0   ;;  %s1861_s15 = smov 0  }
   0x4 LB: > { %s1249_s16 = sadd.s32 4294967295, %s1827_s15   ;;  %p37_p0 = scmp.ne.s32.totalorder %s1819_s13, %s1815_s12  ;;  %s1827_s15 = sphi %s1861_s15, %s2261_s15   ;;  %s1823_s14 = sphi %s1859_s14, %s2260_s14   ;;  %s1819_s13 = sphi %s1857_s13, %s2259_s13   ;;  %s1815_s12 = sphi %s1855_s12, %s2258_s12  }
   0x5   : > { %p1877_p1 = scmp.eq.s32.totalorder %s1249_s16, 0  ;;  %p1251_p2 = scmp.ge.s32.totalorder %s1827_s15, 1 }
   0x6   : > { %p116_p3 = scmp.lt.s32.totalorder %s1827_s15, 3  ;;  %s1829_s20 = smov [#allocation4]  }
   0x7   : > { %s2250_s17 = scalar_select %p1877_p1, 1, 0 }
   0x8   : > { %p1885_p4 = por %p1877_p1, %p37_p0  ;;  %p1889_p5 = pnand %p1251_p2, %p116_p3 }
   0x9   : > { %s128_s21 = sshll.u32 %s1829_s20, 4  ;;  %s1902_s23 = sadd.s32 1, %s1827_s15   ;;  %s129_s21 = int_to_ptr.vmem [resolvable:$true] %s128_s21 }
   0xa   : > { %s2251_s18 = scalar_select %p1885_p4, 1, 0 }
   0xb   : > { %s2252_s19 = scalar_select %p1889_p5, 1, 0 }
   0xc   : > { %p1636_p6 = pneg %p1889_p5  ;;  %s24_s24 = sadd.s32 1, %s1823_s14 }
   0xd   : > { %s21_s25 = ssub.s32 %s1827_s15, %s1902_s23  ;;  %s1731_s28 = scalar_lea.hbm %s2243_s1, 5120 }
   0xe   : > { %p1897_p7 = pnand %p1636_p6, %p1877_p1  ;;  %p1732_p8 = scmp.ne.s32.totalorder %s2243_s1, %s1731_s28 }
   0xf   : > { %p1738_p12 = scmp.lt.u32.totalorder %s1731_s28, %s2243_s1 }
  0x10   : > { %p1733_p9 = pneg %p1897_p7 }
  0x12   : > { %p1734_p10 = pnand %p1733_p9, %p1732_p8 }
  0x14   : > { %p1735_p11 = pneg %p1734_p10 }
  0x16   : > { %p1740_p13 = pnand %p1738_p12, %p1735_p11 }
  0x18   : > { %1743 = shalt.err (!%p1740_p13)
}
  0x19   : > { %s1744_s6 = scalar_lea.vmem %s129_s21, 5120  ;;  %p1752_p6 = scmp.lt.s32.totalorder %s129_s21, %s129_s21 }
  0x1a   : > { %p1745_p0 = scmp.ne.s32.totalorder %s129_s21, %s1744_s6  ;;  %p1753_p1 = scmp.lt.s32.totalorder %s1744_s6, %s1744_s6 }
  0x1c   : > { %p1747_p2 = pnand %p1745_p0, %p1733_p9  ;;  %p1754_p4 = por %p1753_p1, %p1752_p6 }
  0x1e   : > { %p1748_p3 = pneg %p1747_p2 }
  0x20   : > { %p1755_p5 = pnand %p1754_p4, %p1748_p3 }
  0x22   : > { %1758 = shalt.err (!%p1755_p5)
}
  0x23   : > { %s1830_s7 = smov 64   ;;  %s1831_s8 = smov 4  }
  0x24   : > { %1639 = dma.hbm_to_vmem [thread:$0]  (!%p1897_p7), %s2243_s1, 5120, %s129_s21, [#allocation5], %s1830_s7, %s1830_s7, %s1831_s8  }
  0x25   : > { %p22_p1 = scmp.eq.s32.totalorder %s21_s25, 0  ;;  %p31_p4 = scmp.ne.s32.totalorder %s1823_s14, %s1819_s13 }
  0x26   : > { %p32_p5 = scmp.eq.s32.totalorder %s1827_s15, 0  ;;  %p1645_p8 = scmp.lt.s32.totalorder %s1827_s15, 2 }
  0x27   : > { %s1931_s11 = scalar_select %p22_p1, %s1823_s14, %s24_s24  }
  0x28   : > { %p33_p9 = por %p32_p5, %p31_p4  ;;  %s145_s12 = sand.u32 1, %s1823_s14  }
  0x29   : > { %s1628_s20 = smul.u32 56, %s145_s12  ;;  %s1946_s29 = scalar_lea.sflag [#allocation3], %s145_s12 }
  0x2a   : > { %s1316_s26 = smul.u32 896, %s1827_s15  ;;  %p1935_p10 = pnand %p1645_p8, %p33_p9 }
  0x2b   : > { %s149_s24 = scalar_lea.vmem [#allocation2], %s1628_s20  ;;  %s1764_s6 = scalar_lea.hbm %s2242_s0, 1792 }
  0x2c   : > { %s1942_s21 = scalar_lea.hbm %s2242_s0, %s1316_s26  ;;  %s156_s25 = sshll.u32 %s149_s24, 4  ;;  %s1944_s25 = int_to_ptr.vmem [resolvable:$true] %s156_s25 }
  0x2d   : > { %s1759_s30 = scalar_lea.hbm %s1942_s21, 896  ;;  %p1761_p11 = pneg %p1935_p10 }
  0x2e   : > { %p1760_p7 = scmp.ne.s32.totalorder %s1942_s21, %s1759_s30  ;;  %p1765_p0 = scmp.lt.u32.totalorder %s1942_s21, %s2242_s0 }
  0x2f   : > { %p1766_p2 = scmp.lt.u32.totalorder %s1764_s6, %s1759_s30  ;;  %p1768_p6 = scmp.lt.u32.totalorder %s1759_s30, %s1942_s21 }
  0x30   : > { %p1762_p12 = pnand %p1761_p11, %p1760_p7 }
  0x31   : > { %p1767_p3 = por %p1766_p2, %p1765_p0 }
  0x32   : > { %p1763_p13 = pneg %p1762_p12 }
  0x33   : > { %p1769_p1 = por %p1768_p6, %p1767_p3 }
  0x35   : > { %p1770_p4 = pnand %p1769_p1, %p1763_p13 }
  0x37   : > { %1773 = shalt.err (!%p1770_p4)
}
  0x38   : > { %s1774_s12 = scalar_lea.vmem %s1944_s25, 896  ;;  %s1832_s20 = smov [#allocation2]  }
  0x39   : > { %p1775_p5 = scmp.ne.s32.totalorder %s1944_s25, %s1774_s12  ;;  %s1779_s26 = sshll.u32 %s1832_s20, 4  ;;  %s1780_s26 = int_to_ptr.vmem [resolvable:$false] %s1779_s26 }
  0x3a   : > { %s1781_s22 = scalar_lea.vmem %s1780_s26, 1792  ;;  %p1782_p7 = scmp.lt.s32.totalorder %s1944_s25, %s1780_s26 }
  0x3b   : > { %p1777_p8 = pnand %p1775_p5, %p1761_p11  ;;  %p1783_p12 = scmp.lt.s32.totalorder %s1781_s22, %s1774_s12 }
  0x3d   : > { %p1778_p9 = pneg %p1777_p8  ;;  %p1784_p0 = por %p1783_p12, %p1782_p7 }
  0x3f   : > { %p1785_p2 = pnand %p1784_p0, %p1778_p9 }
  0x41   : > { %1788 = shalt.err (!%p1785_p2)
}
  0x42   : > { %1643 = dma.hbm_to_vmem [thread:$0]  (!%p1935_p10), %s1942_s21, 896, %s1944_s25, %s1946_s29, %s1830_s7, %s1830_s7, %s1831_s8  }
  0x43   : > { %p2255_p11 = scmp.ne.s32.totalorder %s2252_s19, 0 }
  0x44   : > { %s170_s28 = sand.u32 (!%p2255_p11), 1, %s1819_s13   ;;  %p2256_p13 = scmp.ne.s32.totalorder (!%p2255_p11), %s2251_s18, 0 }
  0x45   : > { %168 = sbr.rel (%p2255_p11) target bundleno = 1259 (0x4eb), region = 32  ;;  %s171_s30 = scalar_lea.sflag (!%p2255_p11), [#allocation3], %s170_s28 }
  0x46   : > { %s1629_s24 = smul.u32 (!%p2255_p11), 56, %s170_s28 }
  0x48   : > { %s1980_s4 = scalar_lea.vmem (!%p2255_p11), [#allocation2], %s1629_s24 }
  0x4c   : > { %1806 = dma.done.wait (%p2256_p13), %s171_s30, 896  }
  0x4d   : > { %1808 = vsyncadd (%p2256_p13), %s171_s30, 4294966400  ;;  %p2257_p3 = scmp.ne.s32.totalorder %s2250_s17, 0 }
  0x4f   : > { %1810 = dma.done.wait (%p2257_p3), [#allocation5], 5120  }
  0x50   : > { %1812 = vsyncadd (%p2257_p3), [#allocation5], 4294962176  ;;  %v1833_v0 = vmov 0.0   ;;  %vm1834_vm0 = vmmov 0   ;;  %v1684_v1 = vld [vmem:[#allocation4] sm:$0xff]   ;;  %v1685_v2 = vld [vmem:[#allocation4 + $0x8] sm:$0xff]  }
  0x51   : > { %1392 = vmatprep.subr.bf16.mxu0 %v1833_v0  ;;  %1612 = vmatprep.subr.bf16.mxu1 %v1833_v0  ;;  %v1686_v3 = vld [vmem:[#allocation4 + $0x10] sm:$0xff]   ;;  %v1687_v4 = vld [vmem:[#allocation4 + $0x18] sm:$0xff]   ;;  %v1688_v5 = vld [vmem:[#allocation4 + $0x20] sm:$0xff]   ;;  %s202_s29 = smul.u32 14, %s1249_s16  ;;  %vm1157_vm1 = vcmask 818176  }
  0x52   : > { %1408 = vmatprep.mubr.msk.bf16.mxu0 %vm1834_vm0, %v1833_v0  ;;  %1424 = vmatprep.mubr.msk.bf16.mxu1 %vm1834_vm0, %v1833_v0  ;;  %v1689_v6 = vld [vmem:[#allocation4 + $0x28] sm:$0xff]   ;;  %v1690_v7 = vld [vmem:[#allocation4 + $0x30] sm:$0xff]   ;;  %v1691_v8 = vld [vmem:[#allocation4 + $0x38] sm:$0xff]  }
  0x53   : > { %1393 = vmatpush3.bf16.msra.mxu0 %v1684_v1  ;;  %1620 = vmatpush3.bf16.msra.mxu1 %v1684_v1  ;;  %v1692_v9 = vld [vmem:[%s1980_s4] sm:$0xff]   ;;  %v1699_v11 = vld [vmem:[#allocation4 + $0x40] sm:$0xff]   ;;  %v1693_v13 = vld [vmem:[%s1980_s4 + $0x8] sm:$0xff]   ;;  %p203_p10 = scmp.lt.s32.totalorder %s202_s29, 27 }
  0x54   : > { %1394 = vmatprep.subr.bf16.mxu0 %v1833_v0  ;;  %1613 = vmatprep.subr.bf16.mxu1 %v1833_v0  ;;  %v1696_v10 = vld [vmem:[%s1980_s4 + $0x20] sm:$0xff]   ;;  %v1697_v14 = vld [vmem:[%s1980_s4 + $0x28] sm:$0xff]   ;;  %v1694_v17 = vld [vmem:[%s1980_s4 + $0x10] sm:$0xff]  }
  0x55   : > { %v1700_v12 = vld [vmem:[#allocation4 + $0x48] sm:$0xff]   ;;  %v1701_v15 = vld [vmem:[#allocation4 + $0x50] sm:$0xff]   ;;  %v1702_v16 = vld [vmem:[#allocation4 + $0x58] sm:$0xff]   ;;  %s2263_s29 = smov (!%p203_p10, %s202_s29), 27 }
  0x56   : > { %v1698_v18 = vld [vmem:[%s1980_s4 + $0x30] sm:$0xff]   ;;  %v1704_v20 = vld [vmem:[#allocation4 + $0x68] sm:$0xff]   ;;  %v1705_v22 = vld [vmem:[#allocation4 + $0x70] sm:$0xff]   ;;  %s1257_s5 = sshll.u32 %s2263_s29, 3 }
  0x57   : > { %1395 = vmatpush3.bf16.msra.mxu0 %v1685_v2  ;;  %1621 = vmatpush3.bf16.msra.mxu1 %v1685_v2  ;;  %v1703_v19 = vld [vmem:[#allocation4 + $0x60] sm:$0xff]   ;;  %v1706_v23 = vld [vmem:[#allocation4 + $0x78] sm:$0xff]   ;;  %v1708_v25 = vld [vmem:[#allocation4 + $0x88] sm:$0xff]   ;;  %s2199_s20 = scalar_lea.vmem %s2245_s3, %s1257_s5 }
  0x58   : > { %1396 = vmatprep.subr.bf16.mxu0 %v1833_v0  ;;  %1614 = vmatprep.subr.bf16.mxu1 %v1833_v0  ;;  %v1695_v21 = vld [vmem:[%s1980_s4 + $0x18] sm:$0xff]   ;;  %v1709_v26 = vld [vmem:[#allocation4 + $0x90] sm:$0xff]   ;;  %v1710_v27 = vld [vmem:[#allocation4 + $0x98] sm:$0xff]  }
  0x59   : > { %v1707_v24 = vld [vmem:[#allocation4 + $0x80] sm:$0xff]   ;;  %v1712_v29 = vld [vmem:[#allocation4 + $0xa8] sm:$0xff]   ;;  %v2050_v30 = vld [vmem:[%s2244_s2] ss:$0 sm:$0xff] }
  0x5a   : > { %v1711_v28 = vld [vmem:[#allocation4 + $0xa0] sm:$0xff]  }
  0x5b   : > { %1397 = vmatpush3.bf16.msra.mxu0 %v1686_v3  ;;  %1622 = vmatpush3.bf16.msra.mxu1 %v1686_v3 }
  0x5c   : > { %1398 = vmatprep.subr.bf16.mxu0 %v1833_v0  ;;  %1615 = vmatprep.subr.bf16.mxu1 %v1833_v0 }
  0x5f   : > { %1399 = vmatpush3.bf16.msra.mxu0 %v1687_v4  ;;  %1623 = vmatpush3.bf16.msra.mxu1 %v1687_v4 }
  0x60   : > { %1400 = vmatprep.subr.bf16.mxu0 %v1833_v0  ;;  %1616 = vmatprep.subr.bf16.mxu1 %v1833_v0 }
  0x63   : > { %1401 = vmatpush3.bf16.msra.mxu0 %v1688_v5  ;;  %1624 = vmatpush3.bf16.msra.mxu1 %v1688_v5 }
  0x64   : > { %1402 = vmatprep.subr.bf16.mxu0 %v1833_v0  ;;  %1617 = vmatprep.subr.bf16.mxu1 %v1833_v0 }
  0x67   : > { %1403 = vmatpush3.bf16.msra.mxu0 %v1689_v6  ;;  %1625 = vmatpush3.bf16.msra.mxu1 %v1689_v6 }
  0x68   : > { %1404 = vmatprep.subr.bf16.mxu0 %v1833_v0  ;;  %1618 = vmatprep.subr.bf16.mxu1 %v1833_v0 }
  0x6b   : > { %1405 = vmatpush3.bf16.msra.mxu0 %v1690_v7  ;;  %1626 = vmatpush3.bf16.msra.mxu1 %v1690_v7 }
  0x6c   : > { %1406 = vmatprep.subr.bf16.mxu0 %v1833_v0  ;;  %1619 = vmatprep.subr.bf16.mxu1 %v1833_v0 }
  0x6f   : > { %1407 = vmatpush3.bf16.msra.mxu0 %v1691_v8  ;;  %1627 = vmatpush3.bf16.msra.mxu1 %v1691_v8 }
  0x70   : > { %1436 = vmatprep.subr.bf16.mxu1 %v1833_v0  ;;  %1480 = vmatprep.subr.bf16.mxu0 %v1833_v0 }
  0x72   : > { %1409 = vmatmul.mubr.bf16.vlgmr.msra.gmra.mrb[0].mxu0 %v1692_v9  ;;  %1425 = vmatmul.mubr.bf16.vlgmr.msra.gmra.mrb[0].mxu1 %v1696_v10 }
  0x73   : > { %1412 = vmatprep.mubr.msk.bf16.mxu0 %vm1834_vm0, %v1833_v0  ;;  %1428 = vmatprep.mubr.msk.bf16.mxu1 %vm1834_vm0, %v1833_v0 }
  0x74   : > { %1437 = vmatpush3.bf16.msra.mxu1 %v1699_v11  ;;  %1481 = vmatpush3.bf16.msra.mxu0 %v1707_v24 }
  0x75   : > { %1438 = vmatprep.subr.bf16.mxu1 %v1833_v0  ;;  %1482 = vmatprep.subr.bf16.mxu0 %v1833_v0 }
  0x78   : > { %1439 = vmatpush3.bf16.msra.mxu1 %v1700_v12  ;;  %1483 = vmatpush3.bf16.msra.mxu0 %v1708_v25 }
  0x79   : > { %1440 = vmatprep.subr.bf16.mxu1 %v1833_v0  ;;  %1484 = vmatprep.subr.bf16.mxu0 %v1833_v0 }
  0x7a   : > { %1413 = vmatmul.mubr.bf16.gmra.mrb[4].mxu0 %v1693_v13  ;;  %1429 = vmatmul.mubr.bf16.gmra.mrb[4].mxu1 %v1697_v14 }
  0x7b   : > { %1416 = vmatprep.mubr.msk.bf16.mxu0 %vm1834_vm0, %v1833_v0  ;;  %1432 = vmatprep.mubr.msk.bf16.mxu1 %vm1834_vm0, %v1833_v0 }
  0x7c   : > { %1441 = vmatpush3.bf16.msra.mxu1 %v1701_v15  ;;  %1485 = vmatpush3.bf16.msra.mxu0 %v1709_v26 }
  0x7d   : > { %1442 = vmatprep.subr.bf16.mxu1 %v1833_v0  ;;  %1486 = vmatprep.subr.bf16.mxu0 %v1833_v0 }
  0x80   : > { %1443 = vmatpush3.bf16.msra.mxu1 %v1702_v16  ;;  %1487 = vmatpush3.bf16.msra.mxu0 %v1710_v27 }
  0x81   : > { %1444 = vmatprep.subr.bf16.mxu1 %v1833_v0  ;;  %1488 = vmatprep.subr.bf16.mxu0 %v1833_v0 }
  0x82   : > { %1417 = vmatmul.mubr.bf16.gmra.mrb[8].mxu0 %v1694_v17  ;;  %1433 = vmatmul.mubr.bf16.gmra.mrb[8].mxu1 %v1698_v18 }
  0x83   : > { %1420 = vmatprep.mubr.msk.bf16.mxu0 %vm1834_vm0, %v1833_v0  ;;  %1452 = vmatprep.mubr.msk.bf16.mxu1 %vm1834_vm0, %v1833_v0 }
  0x84   : > { %1445 = vmatpush3.bf16.msra.mxu1 %v1703_v19  ;;  %1489 = vmatpush3.bf16.msra.mxu0 %v1711_v28 }
  0x85   : > { %1446 = vmatprep.subr.bf16.mxu1 %v1833_v0  ;;  %1490 = vmatprep.subr.bf16.mxu0 %v1833_v0 }
  0x88   : > { %1447 = vmatpush3.bf16.msra.mxu1 %v1704_v20  ;;  %1491 = vmatpush3.bf16.msra.mxu0 %v1712_v29 }
  0x89   : > { %1448 = vmatprep.subr.bf16.mxu1 %v1833_v0  ;;  %1492 = vmatprep.subr.bf16.mxu0 %v1833_v0 }
  0x8a   : > { %1421 = vmatmul.mubr.bf16.gmra.mrb[12].mxu0 %v1695_v21 }
  0x8b   : > { %1496 = vmatprep.mubr.msk.bf16.mxu0 %vm1834_vm0, %v1833_v0 }
  0x8c   : > { %1449 = vmatpush3.bf16.msra.mxu1 %v1705_v22 }
  0x8d   : > { %1450 = vmatprep.subr.bf16.mxu1 %v1833_v0 }
  0x90   : > { %1451 = vmatpush3.bf16.msra.mxu1 %v1706_v23 }
  0x91   : > { %1524 = vmatprep.subr.bf16.mxu1 %v1833_v0 }
 0x145   : > { %v370_v31 = vpop.f32.mrb[0].mxu0  ;;  %v402_v32 = vpop.f32.mrb[0].mxu1 }
 0x146   : > { %v371_v33 = vadd.f32 %v2050_v30, %v370_v31  ;;  %v1410_v34 = vpop.f32.mrb[1].mxu0  ;;  %v403_v35 = vadd.f32 %v2050_v30, %v402_v32  ;;  %v1426_v36 = vpop.f32.mrb[1].mxu1  ;;  %v1714_v32 = vld [vmem:[#allocation4 + $0xb8] sm:$0xff]  }
 0x147   : > { %v373_v37 = vpop.f32.mrb[2].mxu0  ;;  %v405_v38 = vpop.f32.mrb[2].mxu1  ;;  %v1716_v34 = vld [vmem:[#allocation4 + $0xc8] sm:$0xff]   ;;  %v1718_v36 = vld [vmem:[#allocation4 + $0xd8] sm:$0xff]  }
 0x148   : > { %v374_v39 = vadd.f32 %v2050_v30, %v373_v37  ;;  %v1411_v40 = vpop.f32.mrb[3].mxu0  ;;  %v433_v41 = vmax.f32 %v403_v35, 0.0  ;;  %v406_v42 = vadd.f32 %v2050_v30, %v405_v38  ;;  %v1427_v43 = vpop.f32.mrb[3].mxu1  ;;  %v425_v44 = vmax.f32 %v371_v33, 0.0  ;;  %v1715_v33 = vld [vmem:[#allocation4 + $0xc0] sm:$0xff]   ;;  %v1717_v35 = vld [vmem:[#allocation4 + $0xd0] sm:$0xff]  }
 0x149   : > { %v1719_v37 = vld [vmem:[#allocation4 + $0xe0] sm:$0xff]   ;;  %v1720_v38 = vld [vmem:[#allocation4 + $0xe8] sm:$0xff]   ;;  %v2092_v40 = vld [vmem:[%s2244_s2 + $0x1] ss:$0 sm:$0xff] }
 0x14a   : > { %v426_v45 = vmax.f32 %v374_v39, 0.0  ;;  %v434_v46 = vmax.f32 %v406_v42, 0.0  ;;  %v1721_v39 = vld [vmem:[#allocation4 + $0xf0] sm:$0xff]  }
 0x14c   : > { %v439_v47 = vpack.c.bf16 %v426_v45, %v425_v44  ;;  %v443_v48 = vpack.c.bf16 %v434_v46, %v433_v41 }
 0x14d   : > { %v378_v49 = vpop.f32.mrb[4].mxu0  ;;  %v410_v50 = vpop.f32.mrb[4].mxu1 }
 0x14e   : > { %v379_v51 = vadd.f32 %v2050_v30, %v378_v49  ;;  %v1414_v52 = vpop.f32.mrb[5].mxu0  ;;  %1453 = vmatmul.mubr.bf16.vlgmr.msra.gmra.mrb[12].mxu1 %v439_v47  ;;  %v411_v53 = vadd.f32 %v2050_v30, %v410_v50  ;;  %v1430_v54 = vpop.f32.mrb[5].mxu1 }
 0x14f   : > { %v381_v55 = vpop.f32.mrb[6].mxu0  ;;  %1456 = vmatprep.mubr.msk.bf16.mxu1 %vm1834_vm0, %v1833_v0  ;;  %v413_v56 = vpop.f32.mrb[6].mxu1  ;;  %1525 = vmatpush3.bf16.msra.mxu1 %v1715_v33 }
 0x150   : > { %v382_v57 = vadd.f32 %v2050_v30, %v381_v55  ;;  %v1415_v58 = vpop.f32.mrb[7].mxu0  ;;  %v435_v59 = vmax.f32 %v411_v53, 0.0  ;;  %v414_v60 = vadd.f32 %v2050_v30, %v413_v56  ;;  %v1431_v61 = vpop.f32.mrb[7].mxu1  ;;  %v427_v62 = vmax.f32 %v379_v51, 0.0  ;;  %1526 = vmatprep.subr.bf16.mxu1 %v1833_v0 }
 0x152   : > { %v428_v63 = vmax.f32 %v382_v57, 0.0  ;;  %v436_v1 = vmax.f32 %v414_v60, 0.0 }
 0x153   : > { %1527 = vmatpush3.bf16.msra.mxu1 %v1716_v34 }
 0x154   : > { %v440_v2 = vpack.c.bf16 %v428_v63, %v427_v62  ;;  %v444_v3 = vpack.c.bf16 %v436_v1, %v435_v59  ;;  %1528 = vmatprep.subr.bf16.mxu1 %v1833_v0 }
 0x155   : > { %v386_v4 = vpop.f32.mrb[8].mxu0  ;;  %v418_v5 = vpop.f32.mrb[8].mxu1 }
 0x156   : > { %v387_v6 = vadd.f32 %v2050_v30, %v386_v4  ;;  %v1418_v7 = vpop.f32.mrb[9].mxu0  ;;  %1457 = vmatmul.mubr.bf16.gmra.mrb[16].mxu1 %v440_v2  ;;  %v419_v8 = vadd.f32 %v2050_v30, %v418_v5  ;;  %v1434_v9 = vpop.f32.mrb[9].mxu1 }
 0x157   : > { %v389_v10 = vpop.f32.mrb[10].mxu0  ;;  %1460 = vmatprep.mubr.msk.bf16.mxu1 %vm1834_vm0, %v1833_v0  ;;  %v421_v11 = vpop.f32.mrb[10].mxu1  ;;  %1529 = vmatpush3.bf16.msra.mxu1 %v1717_v35 }
 0x158   : > { %v390_v12 = vadd.f32 %v2050_v30, %v389_v10  ;;  %v1419_v13 = vpop.f32.mrb[11].mxu0  ;;  %v437_v14 = vmax.f32 %v419_v8, 0.0  ;;  %v422_v15 = vadd.f32 %v2050_v30, %v421_v11  ;;  %v1435_v16 = vpop.f32.mrb[11].mxu1  ;;  %v429_v17 = vmax.f32 %v387_v6, 0.0  ;;  %1530 = vmatprep.subr.bf16.mxu1 %v1833_v0 }
 0x15a   : > { %v430_v18 = vmax.f32 %v390_v12, 0.0  ;;  %v438_v19 = vmax.f32 %v422_v15, 0.0 }
 0x15b   : > { %1531 = vmatpush3.bf16.msra.mxu1 %v1718_v36 }
 0x15c   : > { %v441_v20 = vpack.c.bf16 %v430_v18, %v429_v17  ;;  %v445_v21 = vpack.c.bf16 %v438_v19, %v437_v14  ;;  %1532 = vmatprep.subr.bf16.mxu1 %v1833_v0 }
 0x15d   : > { %v394_v22 = vpop.f32.mrb[12].mxu0 }
 0x15e   : > { %v395_v23 = vadd.f32 %v2050_v30, %v394_v22  ;;  %v1422_v24 = vpop.f32.mrb[13].mxu0  ;;  %1461 = vmatmul.mubr.bf16.gmra.mrb[20].mxu1 %v441_v20 }
 0x15f   : > { %v397_v25 = vpop.f32.mrb[14].mxu0  ;;  %1464 = vmatprep.mubr.msk.bf16.mxu1 %vm1834_vm0, %v1833_v0  ;;  %1533 = vmatpush3.bf16.msra.mxu1 %v1719_v37 }
 0x160   : > { %v398_v26 = vadd.f32 %v2050_v30, %v397_v25  ;;  %v1423_v27 = vpop.f32.mrb[15].mxu0  ;;  %v431_v28 = vmax.f32 %v395_v23, 0.0  ;;  %v1713_v30 = vld [vmem:[#allocation4 + $0xb0] sm:$0xff]   ;;  %1534 = vmatprep.subr.bf16.mxu1 %v1833_v0 }
 0x161   : > { %1493 = vmatpush3.bf16.msra.mxu0 %v1713_v30 }
 0x162   : > { %v432_v29 = vmax.f32 %v398_v26, 0.0  ;;  %1494 = vmatprep.subr.bf16.mxu0 %v1833_v0 }
 0x163   : > { %1535 = vmatpush3.bf16.msra.mxu1 %v1720_v38 }
 0x164   : > { %v442_v31 = vpack.c.bf16 %v432_v29, %v431_v28  ;;  %1536 = vmatprep.subr.bf16.mxu1 %v1833_v0 }
 0x165   : > { %1495 = vmatpush3.bf16.msra.mxu0 %v1714_v32 }
 0x166   : > { %1465 = vmatmul.mubr.bf16.gmra.mrb[24].mxu1 %v442_v31  ;;  %1568 = vmatprep.subr.bf16.mxu0 %v1833_v0 }
 0x167   : > { %1468 = vmatprep.mubr.msk.bf16.mxu1 %vm1834_vm0, %v1833_v0  ;;  %1537 = vmatpush3.bf16.msra.mxu1 %v1721_v39 }
 0x168   : > { %1538 = vmatprep.subr.bf16.mxu1 %v1833_v0 }
 0x16e   : > { %1469 = vmatmul.mubr.bf16.gmra.mrb[28].mxu1 %v443_v48 }
 0x16f   : > { %1472 = vmatprep.mubr.msk.bf16.mxu1 %vm1834_vm0, %v1833_v0 }
 0x176   : > { %1473 = vmatmul.mubr.bf16.gmra.mrb[32].mxu1 %v444_v3 }
 0x177   : > { %1476 = vmatprep.mubr.msk.bf16.mxu1 %vm1834_vm0, %v1833_v0 }
 0x17e   : > { %1477 = vmatmul.mubr.bf16.gmra.mrb[36].mxu1 %v445_v21 }
 0x17f   : > { %1540 = vmatprep.mubr.msk.bf16.mxu1 %vm1834_vm0, %v1833_v0 }
 0x221   : > { %v553_v41 = vpop.f32.mrb[12].mxu1 }
 0x222   : > { %v554_v42 = vadd.f32 %v2092_v40, %v553_v41  ;;  %v1454_v43 = vpop.f32.mrb[13].mxu1 }
 0x223   : > { %v556_v44 = vpop.f32.mrb[14].mxu1  ;;  %v1723_v43 = vld [vmem:[#allocation4 + $0x100] sm:$0xff]  }
 0x224   : > { %v557_v45 = vadd.f32 %v2092_v40, %v556_v44  ;;  %v1455_v46 = vpop.f32.mrb[15].mxu1  ;;  %v608_v47 = vmax.f32 %v554_v42, 0.0  ;;  %v1722_v42 = vld [vmem:[#allocation4 + $0xf8] sm:$0xff]   ;;  %v1724_v44 = vld [vmem:[#allocation4 + $0x108] sm:$0xff]  }
 0x225   : > { %1539 = vmatpush3.bf16.msra.mxu1 %v1722_v42  ;;  %v1727_v46 = vld [vmem:[#allocation4 + $0x120] sm:$0xff]  }
 0x226   : > { %v609_v48 = vmax.f32 %v557_v45, 0.0  ;;  %v1725_v45 = vld [vmem:[#allocation4 + $0x110] sm:$0xff]  }
 0x228   : > { %v622_v49 = vpack.c.bf16 %v609_v48, %v608_v47  ;;  %v1728_v47 = vld [vmem:[#allocation4 + $0x128] sm:$0xff]   ;;  %v1729_v48 = vld [vmem:[#allocation4 + $0x130] sm:$0xff]  }
 0x229   : > { %v561_v50 = vpop.f32.mrb[16].mxu1 }
 0x22a   : > { %v562_v51 = vadd.f32 %v2092_v40, %v561_v50  ;;  %v1458_v52 = vpop.f32.mrb[17].mxu1  ;;  %1497 = vmatmul.mubr.bf16.vlgmr.msra.gmra.mrb[16].mxu0 %v622_v49  ;;  %v2132_v49 = vld [vmem:[%s2244_s2 + $0x2] ss:$0 sm:$0xff] }
 0x22b   : > { %v564_v53 = vpop.f32.mrb[18].mxu1  ;;  %1500 = vmatprep.mubr.msk.bf16.mxu0 %vm1834_vm0, %v1833_v0  ;;  %1569 = vmatpush3.bf16.msra.mxu0 %v1723_v43 }
 0x22c   : > { %v565_v54 = vadd.f32 %v2092_v40, %v564_v53  ;;  %v1459_v55 = vpop.f32.mrb[19].mxu1  ;;  %v610_v56 = vmax.f32 %v562_v51, 0.0  ;;  %1570 = vmatprep.subr.bf16.mxu0 %v1833_v0 }
 0x22e   : > { %v611_v57 = vmax.f32 %v565_v54, 0.0 }
 0x22f   : > { %1571 = vmatpush3.bf16.msra.mxu0 %v1724_v44 }
 0x230   : > { %v623_v58 = vpack.c.bf16 %v611_v57, %v610_v56  ;;  %1572 = vmatprep.subr.bf16.mxu0 %v1833_v0 }
 0x231   : > { %v569_v59 = vpop.f32.mrb[20].mxu1 }
 0x232   : > { %v570_v60 = vadd.f32 %v2092_v40, %v569_v59  ;;  %v1462_v61 = vpop.f32.mrb[21].mxu1  ;;  %1501 = vmatmul.mubr.bf16.gmra.mrb[20].mxu0 %v623_v58 }
 0x233   : > { %v572_v62 = vpop.f32.mrb[22].mxu1  ;;  %1504 = vmatprep.mubr.msk.bf16.mxu0 %vm1834_vm0, %v1833_v0  ;;  %1573 = vmatpush3.bf16.msra.mxu0 %v1725_v45 }
 0x234   : > { %v573_v63 = vadd.f32 %v2092_v40, %v572_v62  ;;  %v1463_v1 = vpop.f32.mrb[23].mxu1  ;;  %v612_v2 = vmax.f32 %v570_v60, 0.0  ;;  %1574 = vmatprep.subr.bf16.mxu0 %v1833_v0 }
 0x236   : > { %v613_v3 = vmax.f32 %v573_v63, 0.0 }
 0x238   : > { %v624_v4 = vpack.c.bf16 %v613_v3, %v612_v2 }
 0x239   : > { %v577_v5 = vpop.f32.mrb[24].mxu1 }
 0x23a   : > { %v578_v6 = vadd.f32 %v2092_v40, %v577_v5  ;;  %v1466_v7 = vpop.f32.mrb[25].mxu1  ;;  %1505 = vmatmul.mubr.bf16.gmra.mrb[24].mxu0 %v624_v4 }
 0x23b   : > { %v580_v8 = vpop.f32.mrb[26].mxu1  ;;  %1508 = vmatprep.mubr.msk.bf16.mxu0 %vm1834_vm0, %v1833_v0 }
 0x23c   : > { %v581_v9 = vadd.f32 %v2092_v40, %v580_v8  ;;  %v1467_v10 = vpop.f32.mrb[27].mxu1  ;;  %v614_v11 = vmax.f32 %v578_v6, 0.0 }
 0x23e   : > { %v615_v12 = vmax.f32 %v581_v9, 0.0 }
 0x240   : > { %v625_v13 = vpack.c.bf16 %v615_v12, %v614_v11 }
 0x241   : > { %v585_v14 = vpop.f32.mrb[28].mxu1 }
 0x242   : > { %v586_v15 = vadd.f32 %v2092_v40, %v585_v14  ;;  %v1470_v16 = vpop.f32.mrb[29].mxu1  ;;  %1509 = vmatmul.mubr.bf16.gmra.mrb[28].mxu0 %v625_v13 }
 0x243   : > { %v588_v17 = vpop.f32.mrb[30].mxu1  ;;  %1512 = vmatprep.mubr.msk.bf16.mxu0 %vm1834_vm0, %v1833_v0 }
 0x244   : > { %v589_v18 = vadd.f32 %v2092_v40, %v588_v17  ;;  %v1471_v19 = vpop.f32.mrb[31].mxu1  ;;  %v616_v20 = vmax.f32 %v586_v15, 0.0 }
 0x246   : > { %v617_v21 = vmax.f32 %v589_v18, 0.0 }
 0x248   : > { %v626_v22 = vpack.c.bf16 %v617_v21, %v616_v20 }
 0x249   : > { %v593_v23 = vpop.f32.mrb[32].mxu1 }
 0x24a   : > { %v594_v24 = vadd.f32 %v2092_v40, %v593_v23  ;;  %v1474_v25 = vpop.f32.mrb[33].mxu1  ;;  %1513 = vmatmul.mubr.bf16.gmra.mrb[32].mxu0 %v626_v22 }
 0x24b   : > { %v596_v26 = vpop.f32.mrb[34].mxu1  ;;  %1516 = vmatprep.mubr.msk.bf16.mxu0 %vm1834_vm0, %v1833_v0 }
 0x24c   : > { %v597_v27 = vadd.f32 %v2092_v40, %v596_v26  ;;  %v1475_v28 = vpop.f32.mrb[35].mxu1  ;;  %v618_v29 = vmax.f32 %v594_v24, 0.0 }
 0x24e   : > { %v619_v31 = vmax.f32 %v597_v27, 0.0 }
 0x250   : > { %v627_v30 = vpack.c.bf16 %v619_v31, %v618_v29 }
 0x251   : > { %v601_v32 = vpop.f32.mrb[36].mxu1 }
 0x252   : > { %v602_v33 = vadd.f32 %v2092_v40, %v601_v32  ;;  %v1478_v34 = vpop.f32.mrb[37].mxu1  ;;  %1517 = vmatmul.mubr.bf16.gmra.mrb[36].mxu0 %v627_v30 }
 0x253   : > { %v604_v35 = vpop.f32.mrb[38].mxu1  ;;  %1520 = vmatprep.mubr.msk.bf16.mxu0 %vm1834_vm0, %v1833_v0 }
 0x254   : > { %v605_v36 = vadd.f32 %v2092_v40, %v604_v35  ;;  %v1479_v37 = vpop.f32.mrb[39].mxu1  ;;  %v620_v38 = vmax.f32 %v602_v33, 0.0  ;;  %v1726_v40 = vld [vmem:[#allocation4 + $0x118] sm:$0xff]  }
 0x255   : > { %1575 = vmatpush3.bf16.msra.mxu0 %v1726_v40 }
 0x256   : > { %v621_v39 = vmax.f32 %v605_v36, 0.0  ;;  %1576 = vmatprep.subr.bf16.mxu0 %v1833_v0 }
 0x258   : > { %v628_v41 = vpack.c.bf16 %v621_v39, %v620_v38 }
 0x259   : > { %1577 = vmatpush3.bf16.msra.mxu0 %v1727_v46 }
 0x25a   : > { %1521 = vmatmul.mubr.bf16.gmra.mrb[40].mxu0 %v628_v41  ;;  %1578 = vmatprep.subr.bf16.mxu0 %v1833_v0 }
 0x25b   : > { %1584 = vmatprep.mubr.msk.bf16.mxu0 %vm1834_vm0, %v1833_v0 }
 0x25d   : > { %1579 = vmatpush3.bf16.msra.mxu0 %v1728_v47 }
 0x25e   : > { %1580 = vmatprep.subr.bf16.mxu0 %v1833_v0 }
 0x261   : > { %1581 = vmatpush3.bf16.msra.mxu0 %v1729_v48 }
 0x262   : > { %1582 = vmatprep.subr.bf16.mxu0 %v1833_v0 }
 0x2fd   : > { %v736_v50 = vpop.f32.mrb[16].mxu0 }
 0x2fe   : > { %v737_v51 = vadd.f32 %v2132_v49, %v736_v50  ;;  %v1498_v52 = vpop.f32.mrb[17].mxu0 }
 0x2ff   : > { %v739_v53 = vpop.f32.mrb[18].mxu0  ;;  %v2163_v52 = vld [vmem:[%s2244_s2 + $0x3] ss:$0 sm:$0xff] }
 0x300   : > { %v740_v54 = vadd.f32 %v2132_v49, %v739_v53  ;;  %v1499_v55 = vpop.f32.mrb[19].mxu0  ;;  %v791_v56 = vmax.f32 %v737_v51, 0.0  ;;  %v1730_v51 = vld [vmem:[#allocation4 + $0x138] sm:$0xff]  }
 0x301   : > { %1583 = vmatpush3.bf16.msra.mxu0 %v1730_v51 }
 0x302   : > { %v792_v57 = vmax.f32 %v740_v54, 0.0 }
 0x304   : > { %v805_v58 = vpack.c.bf16 %v792_v57, %v791_v56 }
 0x305   : > { %v744_v59 = vpop.f32.mrb[20].mxu0 }
 0x306   : > { %v745_v60 = vadd.f32 %v2132_v49, %v744_v59  ;;  %v1502_v61 = vpop.f32.mrb[21].mxu0  ;;  %1541 = vmatmul.mubr.bf16.vlgmr.msra.gmra.mrb[40].mxu1 %v805_v58 }
 0x307   : > { %v747_v62 = vpop.f32.mrb[22].mxu0  ;;  %1544 = vmatprep.mubr.msk.bf16.mxu1 %vm1834_vm0, %v1833_v0 }
 0x308   : > { %v748_v63 = vadd.f32 %v2132_v49, %v747_v62  ;;  %v1503_v1 = vpop.f32.mrb[23].mxu0  ;;  %v793_v2 = vmax.f32 %v745_v60, 0.0 }
 0x30a   : > { %v794_v3 = vmax.f32 %v748_v63, 0.0 }
 0x30c   : > { %v806_v4 = vpack.c.bf16 %v794_v3, %v793_v2 }
 0x30d   : > { %v752_v5 = vpop.f32.mrb[24].mxu0 }
 0x30e   : > { %v753_v6 = vadd.f32 %v2132_v49, %v752_v5  ;;  %v1506_v7 = vpop.f32.mrb[25].mxu0  ;;  %1545 = vmatmul.mubr.bf16.gmra.mrb[44].mxu1 %v806_v4 }
 0x30f   : > { %v755_v8 = vpop.f32.mrb[26].mxu0  ;;  %1548 = vmatprep.mubr.msk.bf16.mxu1 %vm1834_vm0, %v1833_v0 }
 0x310   : > { %v756_v9 = vadd.f32 %v2132_v49, %v755_v8  ;;  %v1507_v10 = vpop.f32.mrb[27].mxu0  ;;  %v795_v11 = vmax.f32 %v753_v6, 0.0 }
 0x312   : > { %v796_v12 = vmax.f32 %v756_v9, 0.0 }
 0x314   : > { %v807_v13 = vpack.c.bf16 %v796_v12, %v795_v11 }
 0x315   : > { %v760_v14 = vpop.f32.mrb[28].mxu0 }
 0x316   : > { %v761_v15 = vadd.f32 %v2132_v49, %v760_v14  ;;  %v1510_v16 = vpop.f32.mrb[29].mxu0  ;;  %1549 = vmatmul.mubr.bf16.gmra.mrb[48].mxu1 %v807_v13 }
 0x317   : > { %v763_v17 = vpop.f32.mrb[30].mxu0  ;;  %1552 = vmatprep.mubr.msk.bf16.mxu1 %vm1834_vm0, %v1833_v0 }
 0x318   : > { %v764_v18 = vadd.f32 %v2132_v49, %v763_v17  ;;  %v1511_v19 = vpop.f32.mrb[31].mxu0  ;;  %v797_v20 = vmax.f32 %v761_v15, 0.0 }
 0x31a   : > { %v798_v21 = vmax.f32 %v764_v18, 0.0 }
 0x31c   : > { %v808_v22 = vpack.c.bf16 %v798_v21, %v797_v20 }
 0x31d   : > { %v768_v23 = vpop.f32.mrb[32].mxu0 }
 0x31e   : > { %v769_v24 = vadd.f32 %v2132_v49, %v768_v23  ;;  %v1514_v25 = vpop.f32.mrb[33].mxu0  ;;  %1553 = vmatmul.mubr.bf16.gmra.mrb[52].mxu1 %v808_v22 }
 0x31f   : > { %v771_v26 = vpop.f32.mrb[34].mxu0  ;;  %1556 = vmatprep.mubr.msk.bf16.mxu1 %vm1834_vm0, %v1833_v0 }
 0x320   : > { %v772_v27 = vadd.f32 %v2132_v49, %v771_v26  ;;  %v1515_v28 = vpop.f32.mrb[35].mxu0  ;;  %v799_v29 = vmax.f32 %v769_v24, 0.0 }
 0x322   : > { %v800_v31 = vmax.f32 %v772_v27, 0.0 }
 0x324   : > { %v809_v30 = vpack.c.bf16 %v800_v31, %v799_v29 }
 0x325   : > { %v776_v32 = vpop.f32.mrb[36].mxu0 }
 0x326   : > { %v777_v33 = vadd.f32 %v2132_v49, %v776_v32  ;;  %v1518_v34 = vpop.f32.mrb[37].mxu0  ;;  %1557 = vmatmul.mubr.bf16.gmra.mrb[56].mxu1 %v809_v30 }
 0x327   : > { %v779_v35 = vpop.f32.mrb[38].mxu0  ;;  %1560 = vmatprep.mubr.msk.bf16.mxu1 %vm1834_vm0, %v1833_v0 }
 0x328   : > { %v780_v36 = vadd.f32 %v2132_v49, %v779_v35  ;;  %v1519_v37 = vpop.f32.mrb[39].mxu0  ;;  %v801_v38 = vmax.f32 %v777_v33, 0.0 }
 0x32a   : > { %v802_v39 = vmax.f32 %v780_v36, 0.0 }
 0x32c   : > { %v810_v41 = vpack.c.bf16 %v802_v39, %v801_v38 }
 0x32d   : > { %v784_v42 = vpop.f32.mrb[40].mxu0 }
 0x32e   : > { %v785_v43 = vadd.f32 %v2132_v49, %v784_v42  ;;  %v1522_v44 = vpop.f32.mrb[41].mxu0  ;;  %1561 = vmatmul.mubr.bf16.gmra.mrb[60].mxu1 %v810_v41 }
 0x32f   : > { %v787_v45 = vpop.f32.mrb[42].mxu0  ;;  %1564 = vmatprep.mubr.msk.bf16.mxu1 %vm1834_vm0, %v1833_v0 }
 0x330   : > { %v788_v40 = vadd.f32 %v2132_v49, %v787_v45  ;;  %v1523_v46 = vpop.f32.mrb[43].mxu0  ;;  %v803_v47 = vmax.f32 %v785_v43, 0.0 }
 0x332   : > { %v804_v48 = vmax.f32 %v788_v40, 0.0 }
 0x334   : > { %v811_v50 = vpack.c.bf16 %v804_v48, %v803_v47 }
 0x336   : > { %1565 = vmatmul.mubr.bf16.gmra.mrb[64].mxu1 %v811_v50 }
 0x3d9   : > { %v919_v53 = vpop.f32.mrb[40].mxu1 }
 0x3da   : > { %v920_v54 = vadd.f32 %v2163_v52, %v919_v53  ;;  %v1542_v55 = vpop.f32.mrb[41].mxu1 }
 0x3db   : > { %v922_v56 = vpop.f32.mrb[42].mxu1 }
 0x3dc   : > { %v923_v57 = vadd.f32 %v2163_v52, %v922_v56  ;;  %v1543_v49 = vpop.f32.mrb[43].mxu1  ;;  %v974_v58 = vmax.f32 %v920_v54, 0.0  ;;  %v1305_v54 = vld [vmem:[%s2244_s2 + $0x4] ss:$0 sm:$0xff] }
 0x3de   : > { %v975_v59 = vmax.f32 %v923_v57, 0.0 }
 0x3e0   : > { %v988_v60 = vpack.c.bf16 %v975_v59, %v974_v58 }
 0x3e1   : > { %v927_v61 = vpop.f32.mrb[44].mxu1 }
 0x3e2   : > { %v928_v62 = vadd.f32 %v2163_v52, %v927_v61  ;;  %v1546_v63 = vpop.f32.mrb[45].mxu1  ;;  %1585 = vmatmul.mubr.bf16.vlgmr.msra.gmra.mrb[44].mxu0 %v988_v60 }
 0x3e3   : > { %v930_v1 = vpop.f32.mrb[46].mxu1  ;;  %1588 = vmatprep.mubr.msk.bf16.mxu0 %vm1834_vm0, %v1833_v0 }
 0x3e4   : > { %v931_v2 = vadd.f32 %v2163_v52, %v930_v1  ;;  %v1547_v3 = vpop.f32.mrb[47].mxu1  ;;  %v976_v4 = vmax.f32 %v928_v62, 0.0 }
 0x3e6   : > { %v977_v5 = vmax.f32 %v931_v2, 0.0 }
 0x3e8   : > { %v989_v6 = vpack.c.bf16 %v977_v5, %v976_v4 }
 0x3e9   : > { %v935_v7 = vpop.f32.mrb[48].mxu1 }
 0x3ea   : > { %v936_v8 = vadd.f32 %v2163_v52, %v935_v7  ;;  %v1550_v9 = vpop.f32.mrb[49].mxu1  ;;  %1589 = vmatmul.mubr.bf16.gmra.mrb[48].mxu0 %v989_v6 }
 0x3eb   : > { %v938_v10 = vpop.f32.mrb[50].mxu1  ;;  %1592 = vmatprep.mubr.msk.bf16.mxu0 %vm1834_vm0, %v1833_v0 }
 0x3ec   : > { %v939_v11 = vadd.f32 %v2163_v52, %v938_v10  ;;  %v1551_v12 = vpop.f32.mrb[51].mxu1  ;;  %v978_v13 = vmax.f32 %v936_v8, 0.0 }
 0x3ee   : > { %v979_v14 = vmax.f32 %v939_v11, 0.0 }
 0x3f0   : > { %v990_v15 = vpack.c.bf16 %v979_v14, %v978_v13 }
 0x3f1   : > { %v943_v16 = vpop.f32.mrb[52].mxu1 }
 0x3f2   : > { %v944_v17 = vadd.f32 %v2163_v52, %v943_v16  ;;  %v1554_v18 = vpop.f32.mrb[53].mxu1  ;;  %1593 = vmatmul.mubr.bf16.gmra.mrb[52].mxu0 %v990_v15 }
 0x3f3   : > { %v946_v19 = vpop.f32.mrb[54].mxu1  ;;  %1596 = vmatprep.mubr.msk.bf16.mxu0 %vm1834_vm0, %v1833_v0 }
 0x3f4   : > { %v947_v20 = vadd.f32 %v2163_v52, %v946_v19  ;;  %v1555_v21 = vpop.f32.mrb[55].mxu1  ;;  %v980_v22 = vmax.f32 %v944_v17, 0.0 }
 0x3f6   : > { %v981_v23 = vmax.f32 %v947_v20, 0.0 }
 0x3f8   : > { %v991_v24 = vpack.c.bf16 %v981_v23, %v980_v22 }
 0x3f9   : > { %v951_v25 = vpop.f32.mrb[56].mxu1 }
 0x3fa   : > { %v952_v26 = vadd.f32 %v2163_v52, %v951_v25  ;;  %v1558_v27 = vpop.f32.mrb[57].mxu1  ;;  %1597 = vmatmul.mubr.bf16.gmra.mrb[56].mxu0 %v991_v24 }
 0x3fb   : > { %v954_v28 = vpop.f32.mrb[58].mxu1  ;;  %1600 = vmatprep.mubr.msk.bf16.mxu0 %vm1834_vm0, %v1833_v0 }
 0x3fc   : > { %v955_v29 = vadd.f32 %v2163_v52, %v954_v28  ;;  %v1559_v31 = vpop.f32.mrb[59].mxu1  ;;  %v982_v30 = vmax.f32 %v952_v26, 0.0 }
 0x3fe   : > { %v983_v32 = vmax.f32 %v955_v29, 0.0 }
 0x400   : > { %v992_v33 = vpack.c.bf16 %v983_v32, %v982_v30 }
 0x401   : > { %v959_v34 = vpop.f32.mrb[60].mxu1 }
 0x402   : > { %v960_v35 = vadd.f32 %v2163_v52, %v959_v34  ;;  %v1562_v36 = vpop.f32.mrb[61].mxu1  ;;  %1601 = vmatmul.mubr.bf16.gmra.mrb[60].mxu0 %v992_v33 }
 0x403   : > { %v962_v37 = vpop.f32.mrb[62].mxu1  ;;  %1604 = vmatprep.mubr.msk.bf16.mxu0 %vm1834_vm0, %v1833_v0 }
 0x404   : > { %v963_v38 = vadd.f32 %v2163_v52, %v962_v37  ;;  %v1563_v39 = vpop.f32.mrb[63].mxu1  ;;  %v984_v41 = vmax.f32 %v960_v35, 0.0 }
 0x406   : > { %v985_v42 = vmax.f32 %v963_v38, 0.0 }
 0x408   : > { %v993_v43 = vpack.c.bf16 %v985_v42, %v984_v41 }
 0x409   : > { %v967_v44 = vpop.f32.mrb[64].mxu1 }
 0x40a   : > { %v968_v45 = vadd.f32 %v2163_v52, %v967_v44  ;;  %v1566_v40 = vpop.f32.mrb[65].mxu1  ;;  %1605 = vmatmul.mubr.bf16.gmra.mrb[64].mxu0 %v993_v43 }
 0x40b   : > { %v970_v46 = vpop.f32.mrb[66].mxu1  ;;  %1608 = vmatprep.mubr.msk.bf16.mxu0 %vm1834_vm0, %v1833_v0 }
 0x40c   : > { %v971_v47 = vadd.f32 %v2163_v52, %v970_v46  ;;  %v1567_v48 = vpop.f32.mrb[67].mxu1  ;;  %v986_v50 = vmax.f32 %v968_v45, 0.0 }
 0x40e   : > { %v987_v51 = vmax.f32 %v971_v47, 0.0 }
 0x410   : > { %v994_v53 = vpack.c.bf16 %v987_v51, %v986_v50 }
 0x412   : > { %1609 = vmatmul.mubr.bf16.gmra.mrb[68].mxu0 %v994_v53 }
 0x4b5   : > { %v1102_v0 = vpop.f32.mrb[44].mxu0 }
 0x4b6   : > { %v1103_v52 = vadd.f32 %v1305_v54, %v1102_v0  ;;  %v1586_v55 = vpop.f32.mrb[45].mxu0 }
 0x4b7   : > { %v1105_v56 = vpop.f32.mrb[46].mxu0 }
 0x4b8   : > { %1158 = vst.msk [vmem:[%s2199_s20] sm:$0xff] %vm1157_vm1, %v1103_v52  ;;  %v1106_v57 = vadd.f32 %v1305_v54, %v1105_v56  ;;  %v1587_v49 = vpop.f32.mrb[47].mxu0 }
 0x4ba   : > { %1159 = vst.msk [vmem:[%s2199_s20 + $0x8] sm:$0xff] %vm1157_vm1, %v1106_v57 }
 0x4bd   : > { %v1110_v58 = vpop.f32.mrb[48].mxu0 }
 0x4be   : > { %v1111_v59 = vadd.f32 %v1305_v54, %v1110_v58  ;;  %v1590_v60 = vpop.f32.mrb[49].mxu0 }
 0x4bf   : > { %v1113_v61 = vpop.f32.mrb[50].mxu0 }
 0x4c0   : > { %1160 = vst.msk [vmem:[%s2199_s20 + $0x10] sm:$0xff] %vm1157_vm1, %v1111_v59  ;;  %v1114_v62 = vadd.f32 %v1305_v54, %v1113_v61  ;;  %v1591_v63 = vpop.f32.mrb[51].mxu0 }
 0x4c2   : > { %1161 = vst.msk [vmem:[%s2199_s20 + $0x18] sm:$0xff] %vm1157_vm1, %v1114_v62 }
 0x4c5   : > { %v1118_v1 = vpop.f32.mrb[52].mxu0 }
 0x4c6   : > { %v1119_v2 = vadd.f32 %v1305_v54, %v1118_v1  ;;  %v1594_v3 = vpop.f32.mrb[53].mxu0 }
 0x4c7   : > { %v1121_v4 = vpop.f32.mrb[54].mxu0 }
 0x4c8   : > { %1162 = vst.msk [vmem:[%s2199_s20 + $0x20] sm:$0xff] %vm1157_vm1, %v1119_v2  ;;  %v1122_v5 = vadd.f32 %v1305_v54, %v1121_v4  ;;  %v1595_v6 = vpop.f32.mrb[55].mxu0 }
 0x4ca   : > { %1163 = vst.msk [vmem:[%s2199_s20 + $0x28] sm:$0xff] %vm1157_vm1, %v1122_v5 }
 0x4cd   : > { %v1126_v7 = vpop.f32.mrb[56].mxu0 }
 0x4ce   : > { %v1127_v8 = vadd.f32 %v1305_v54, %v1126_v7  ;;  %v1598_v9 = vpop.f32.mrb[57].mxu0 }
 0x4cf   : > { %v1129_v10 = vpop.f32.mrb[58].mxu0 }
 0x4d0   : > { %1164 = vst.msk [vmem:[%s2199_s20 + $0x30] sm:$0xff] %vm1157_vm1, %v1127_v8  ;;  %v1130_v11 = vadd.f32 %v1305_v54, %v1129_v10  ;;  %v1599_v12 = vpop.f32.mrb[59].mxu0 }
 0x4d2   : > { %1165 = vst.msk [vmem:[%s2199_s20 + $0x38] sm:$0xff] %vm1157_vm1, %v1130_v11 }
 0x4d5   : > { %v1134_v13 = vpop.f32.mrb[60].mxu0 }
 0x4d6   : > { %v1135_v14 = vadd.f32 %v1305_v54, %v1134_v13  ;;  %v1602_v15 = vpop.f32.mrb[61].mxu0 }
 0x4d7   : > { %v1137_v16 = vpop.f32.mrb[62].mxu0 }
 0x4d8   : > { %1166 = vst.msk [vmem:[%s2199_s20 + $0x40] sm:$0xff] %vm1157_vm1, %v1135_v14  ;;  %v1138_v17 = vadd.f32 %v1305_v54, %v1137_v16  ;;  %v1603_v18 = vpop.f32.mrb[63].mxu0 }
 0x4da   : > { %1167 = vst.msk [vmem:[%s2199_s20 + $0x48] sm:$0xff] %vm1157_vm1, %v1138_v17 }
 0x4dd   : > { %v1142_v19 = vpop.f32.mrb[64].mxu0 }
 0x4de   : > { %v1143_v20 = vadd.f32 %v1305_v54, %v1142_v19  ;;  %v1606_v21 = vpop.f32.mrb[65].mxu0 }
 0x4df   : > { %v1145_v22 = vpop.f32.mrb[66].mxu0 }
 0x4e0   : > { %1168 = vst.msk [vmem:[%s2199_s20 + $0x50] sm:$0xff] %vm1157_vm1, %v1143_v20  ;;  %v1146_v23 = vadd.f32 %v1305_v54, %v1145_v22  ;;  %v1607_v24 = vpop.f32.mrb[67].mxu0 }
 0x4e2   : > { %1169 = vst.msk [vmem:[%s2199_s20 + $0x58] sm:$0xff] %vm1157_vm1, %v1146_v23 }
 0x4e5   : > { %v1150_v25 = vpop.f32.mrb[68].mxu0 }
 0x4e6   : > { %v1151_v26 = vadd.f32 %v1305_v54, %v1150_v25  ;;  %v1610_v27 = vpop.f32.mrb[69].mxu0 }
 0x4e7   : > { %v1153_v28 = vpop.f32.mrb[70].mxu0 }
 0x4e8   : > { %1170 = vst.msk [vmem:[%s2199_s20 + $0x60] sm:$0xff] %vm1157_vm1, %v1151_v26  ;;  %v1154_v29 = vadd.f32 %v1305_v54, %v1153_v28  ;;  %v1611_v31 = vpop.f32.mrb[71].mxu0 }
 0x4ea   : > { %1171 = vst.msk [vmem:[%s2199_s20 + $0x68] sm:$0xff] %vm1157_vm1, %v1154_v29 }
 0x4eb PF: > { %p14_p6 = scmp.ge.s32.totalorder %s1902_s23, 4   ;;  %s2258_s12 = smov %s1819_s13 }
 0x4ec   : > { %s2259_s13 = smov %s1823_s14  ;;  %s2260_s14 = smov %s1931_s11 }
 0x4ed   : > { %s2261_s15 = smov %s1902_s23  ;;  %16 = sbr.rel (!%p14_p6) target bundleno = 4 (0x4), region = 84 }
 0x4f4   :  { %1194 = vsyncpa [#allocation3], 1 }
 0x4f5   :  { %1196 = vsyncpa [#allocation3 + $0x1], 1 }
 0x4f6   :  { %1197 = vsyncpa [#allocation5], 1 }

// kernel: tpu_custom_call.1
= control target key start
LH: loop header
LB: loop body
LE: loop exit
PB: predicated region body
PF: predicated region fallthrough
CT: control target
= control target key end

     0   :  { %8 = vsyncpa [#allocation3], 0  ;;  %s2242_s0 = inlined_call_operand.hbm [shape: bf16[224,128], index: 0, kind: input, shape index: {}]   ;;  %s2243_s1 = inlined_call_operand.hbm [shape: bf16[5,128,128], index: 1, kind: input, shape index: {}]   ;;  %s2244_s2 = inlined_call_operand.vmem [shape: f32[5,1,128], index: 2, kind: input, shape index: {}]   ;;  %s2245_s3 = inlined_call_operand.vmem [shape: f32[224,100], index: 3, kind: output, shape index: {}]  }
   0x1   :  { %10 = vsyncpa [#allocation3 + $0x1], 0 }
   0x2   :  { %11 = vsyncpa [#allocation5], 0  ;;  %s1855_s12 = smov 0   ;;  %s1857_s13 = smov 0  }
   0x3   :  { %s1859_s14 = smov 0   ;;  %s1861_s15 = smov 0  }
   0x4 LB: > { %s1249_s16 = sadd.s32 4294967295, %s1827_s15   ;;  %p37_p0 = scmp.ne.s32.totalorder %s1819_s13, %s1815_s12  ;;  %s1827_s15 = sphi %s1861_s15, %s2261_s15   ;;  %s1823_s14 = sphi %s1859_s14, %s2260_s14   ;;  %s1819_s13 = sphi %s1857_s13, %s2259_s13   ;;  %s1815_s12 = sphi %s1855_s12, %s2258_s12  }
   0x5   : > { %p1877_p1 = scmp.eq.s32.totalorder %s1249_s16, 0  ;;  %p1251_p2 = scmp.ge.s32.totalorder %s1827_s15, 1 }
   0x6   : > { %p116_p3 = scmp.lt.s32.totalorder %s1827_s15, 3  ;;  %s1829_s20 = smov [#allocation4]  }
   0x7   : > { %s2250_s17 = scalar_select %p1877_p1, 1, 0 }
   0x8   : > { %p1885_p4 = por %p1877_p1, %p37_p0  ;;  %p1889_p5 = pnand %p1251_p2, %p116_p3 }
   0x9   : > { %s128_s21 = sshll.u32 %s1829_s20, 4  ;;  %s1902_s23 = sadd.s32 1, %s1827_s15   ;;  %s129_s21 = int_to_ptr.vmem [resolvable:$true] %s128_s21 }
   0xa   : > { %s2251_s18 = scalar_select %p1885_p4, 1, 0 }
   0xb   : > { %s2252_s19 = scalar_select %p1889_p5, 1, 0 }
   0xc   : > { %p1636_p6 = pneg %p1889_p5  ;;  %s24_s24 = sadd.s32 1, %s1823_s14 }
   0xd   : > { %s21_s25 = ssub.s32 %s1827_s15, %s1902_s23  ;;  %s1731_s28 = scalar_lea.hbm %s2243_s1, 5120 }
   0xe   : > { %p1897_p7 = pnand %p1636_p6, %p1877_p1  ;;  %p1732_p8 = scmp.ne.s32.totalorder %s2243_s1, %s1731_s28 }
   0xf   : > { %p1738_p12 = scmp.lt.u32.totalorder %s1731_s28, %s2243_s1 }
  0x10   : > { %p1733_p9 = pneg %p1897_p7 }
  0x12   : > { %p1734_p10 = pnand %p1733_p9, %p1732_p8 }
  0x14   : > { %p1735_p11 = pneg %p1734_p10 }
  0x16   : > { %p1740_p13 = pnand %p1738_p12, %p1735_p11 }
  0x18   : > { %1743 = shalt.err (!%p1740_p13)
}
  0x19   : > { %s1744_s6 = scalar_lea.vmem %s129_s21, 5120  ;;  %p1752_p6 = scmp.lt.s32.totalorder %s129_s21, %s129_s21 }
  0x1a   : > { %p1745_p0 = scmp.ne.s32.totalorder %s129_s21, %s1744_s6  ;;  %p1753_p1 = scmp.lt.s32.totalorder %s1744_s6, %s1744_s6 }
  0x1c   : > { %p1747_p2 = pnand %p1745_p0, %p1733_p9  ;;  %p1754_p4 = por %p1753_p1, %p1752_p6 }
  0x1e   : > { %p1748_p3 = pneg %p1747_p2 }
  0x20   : > { %p1755_p5 = pnand %p1754_p4, %p1748_p3 }
  0x22   : > { %1758 = shalt.err (!%p1755_p5)
}
  0x23   : > { %s1830_s7 = smov 64   ;;  %s1831_s8 = smov 4  }
  0x24   : > { %1639 = dma.hbm_to_vmem [thread:$0]  (!%p1897_p7), %s2243_s1, 5120, %s129_s21, [#allocation5], %s1830_s7, %s1830_s7, %s1831_s8  }
  0x25   : > { %p22_p1 = scmp.eq.s32.totalorder %s21_s25, 0  ;;  %p31_p4 = scmp.ne.s32.totalorder %s1823_s14, %s1819_s13 }
  0x26   : > { %p32_p5 = scmp.eq.s32.totalorder %s1827_s15, 0  ;;  %p1645_p8 = scmp.lt.s32.totalorder %s1827_s15, 2 }
  0x27   : > { %s1931_s11 = scalar_select %p22_p1, %s1823_s14, %s24_s24  }
  0x28   : > { %p33_p9 = por %p32_p5, %p31_p4  ;;  %s145_s12 = sand.u32 1, %s1823_s14  }
  0x29   : > { %s1628_s20 = smul.u32 56, %s145_s12  ;;  %s1946_s29 = scalar_lea.sflag [#allocation3], %s145_s12 }
  0x2a   : > { %s1316_s26 = smul.u32 896, %s1827_s15  ;;  %p1935_p10 = pnand %p1645_p8, %p33_p9 }
  0x2b   : > { %s149_s24 = scalar_lea.vmem [#allocation2], %s1628_s20  ;;  %s1764_s6 = scalar_lea.hbm %s2242_s0, 1792 }
  0x2c   : > { %s1942_s21 = scalar_lea.hbm %s2242_s0, %s1316_s26  ;;  %s156_s25 = sshll.u32 %s149_s24, 4  ;;  %s1944_s25 = int_to_ptr.vmem [resolvable:$true] %s156_s25 }
  0x2d   : > { %s1759_s30 = scalar_lea.hbm %s1942_s21, 896  ;;  %p1761_p11 = pneg %p1935_p10 }
  0x2e   : > { %p1760_p7 = scmp.ne.s32.totalorder %s1942_s21, %s1759_s30  ;;  %p1765_p0 = scmp.lt.u32.totalorder %s1942_s21, %s2242_s0 }
  0x2f   : > { %p1766_p2 = scmp.lt.u32.totalorder %s1764_s6, %s1759_s30  ;;  %p1768_p6 = scmp.lt.u32.totalorder %s1759_s30, %s1942_s21 }
  0x30   : > { %p1762_p12 = pnand %p1761_p11, %p1760_p7 }
  0x31   : > { %p1767_p3 = por %p1766_p2, %p1765_p0 }
  0x32   : > { %p1763_p13 = pneg %p1762_p12 }
  0x33   : > { %p1769_p1 = por %p1768_p6, %p1767_p3 }
  0x35   : > { %p1770_p4 = pnand %p1769_p1, %p1763_p13 }
  0x37   : > { %1773 = shalt.err (!%p1770_p4)
}
  0x38   : > { %s1774_s12 = scalar_lea.vmem %s1944_s25, 896  ;;  %s1832_s20 = smov [#allocation2]  }
  0x39   : > { %p1775_p5 = scmp.ne.s32.totalorder %s1944_s25, %s1774_s12  ;;  %s1779_s26 = sshll.u32 %s1832_s20, 4  ;;  %s1780_s26 = int_to_ptr.vmem [resolvable:$false] %s1779_s26 }
  0x3a   : > { %s1781_s22 = scalar_lea.vmem %s1780_s26, 1792  ;;  %p1782_p7 = scmp.lt.s32.totalorder %s1944_s25, %s1780_s26 }
  0x3b   : > { %p1777_p8 = pnand %p1775_p5, %p1761_p11  ;;  %p1783_p12 = scmp.lt.s32.totalorder %s1781_s22, %s1774_s12 }
  0x3d   : > { %p1778_p9 = pneg %p1777_p8  ;;  %p1784_p0 = por %p1783_p12, %p1782_p7 }
  0x3f   : > { %p1785_p2 = pnand %p1784_p0, %p1778_p9 }
  0x41   : > { %1788 = shalt.err (!%p1785_p2)
}
  0x42   : > { %1643 = dma.hbm_to_vmem [thread:$0]  (!%p1935_p10), %s1942_s21, 896, %s1944_s25, %s1946_s29, %s1830_s7, %s1830_s7, %s1831_s8  }
  0x43   : > { %p2255_p11 = scmp.ne.s32.totalorder %s2252_s19, 0 }
  0x44   : > { %s170_s28 = sand.u32 (!%p2255_p11), 1, %s1819_s13   ;;  %p2256_p13 = scmp.ne.s32.totalorder (!%p2255_p11), %s2251_s18, 0 }
  0x45   : > { %168 = sbr.rel (%p2255_p11) target bundleno = 1259 (0x4eb), region = 32  ;;  %s171_s30 = scalar_lea.sflag (!%p2255_p11), [#allocation3], %s170_s28 }
  0x46   : > { %s1629_s24 = smul.u32 (!%p2255_p11), 56, %s170_s28 }
  0x48   : > { %s1980_s4 = scalar_lea.vmem (!%p2255_p11), [#allocation2], %s1629_s24 }
  0x4c   : > { %1806 = dma.done.wait (%p2256_p13), %s171_s30, 896  }
  0x4d   : > { %1808 = vsyncadd (%p2256_p13), %s171_s30, 4294966400  ;;  %p2257_p3 = scmp.ne.s32.totalorder %s2250_s17, 0 }
  0x4f   : > { %1810 = dma.done.wait (%p2257_p3), [#allocation5], 5120  }
  0x50   : > { %1812 = vsyncadd (%p2257_p3), [#allocation5], 4294962176  ;;  %v1833_v0 = vmov 0.0   ;;  %vm1834_vm0 = vmmov 0   ;;  %v1684_v1 = vld [vmem:[#allocation4] sm:$0xff]   ;;  %v1685_v2 = vld [vmem:[#allocation4 + $0x8] sm:$0xff]  }
  0x51   : > { %1392 = vmatprep.subr.bf16.mxu0 %v1833_v0  ;;  %1612 = vmatprep.subr.bf16.mxu1 %v1833_v0  ;;  %v1686_v3 = vld [vmem:[#allocation4 + $0x10] sm:$0xff]   ;;  %v1687_v4 = vld [vmem:[#allocation4 + $0x18] sm:$0xff]   ;;  %v1688_v5 = vld [vmem:[#allocation4 + $0x20] sm:$0xff]   ;;  %s202_s29 = smul.u32 14, %s1249_s16  ;;  %vm1157_vm1 = vcmask 818176  }
  0x52   : > { %1408 = vmatprep.mubr.msk.bf16.mxu0 %vm1834_vm0, %v1833_v0  ;;  %1424 = vmatprep.mubr.msk.bf16.mxu1 %vm1834_vm0, %v1833_v0  ;;  %v1689_v6 = vld [vmem:[#allocation4 + $0x28] sm:$0xff]   ;;  %v1690_v7 = vld [vmem:[#allocation4 + $0x30] sm:$0xff]   ;;  %v1691_v8 = vld [vmem:[#allocation4 + $0x38] sm:$0xff]  }
  0x53   : > { %1393 = vmatpush3.bf16.msra.mxu0 %v1684_v1  ;;  %1620 = vmatpush3.bf16.msra.mxu1 %v1684_v1  ;;  %v1692_v9 = vld [vmem:[%s1980_s4] sm:$0xff]   ;;  %v1699_v11 = vld [vmem:[#allocation4 + $0x40] sm:$0xff]   ;;  %v1693_v13 = vld [vmem:[%s1980_s4 + $0x8] sm:$0xff]   ;;  %p203_p10 = scmp.lt.s32.totalorder %s202_s29, 27 }
  0x54   : > { %1394 = vmatprep.subr.bf16.mxu0 %v1833_v0  ;;  %1613 = vmatprep.subr.bf16.mxu1 %v1833_v0  ;;  %v1696_v10 = vld [vmem:[%s1980_s4 + $0x20] sm:$0xff]   ;;  %v1697_v14 = vld [vmem:[%s1980_s4 + $0x28] sm:$0xff]   ;;  %v1694_v17 = vld [vmem:[%s1980_s4 + $0x10] sm:$0xff]  }
  0x55   : > { %v1700_v12 = vld [vmem:[#allocation4 + $0x48] sm:$0xff]   ;;  %v1701_v15 = vld [vmem:[#allocation4 + $0x50] sm:$0xff]   ;;  %v1702_v16 = vld [vmem:[#allocation4 + $0x58] sm:$0xff]   ;;  %s2263_s29 = smov (!%p203_p10, %s202_s29), 27 }
  0x56   : > { %v1698_v18 = vld [vmem:[%s1980_s4 + $0x30] sm:$0xff]   ;;  %v1704_v20 = vld [vmem:[#allocation4 + $0x68] sm:$0xff]   ;;  %v1705_v22 = vld [vmem:[#allocation4 + $0x70] sm:$0xff]   ;;  %s1257_s5 = sshll.u32 %s2263_s29, 3 }
  0x57   : > { %1395 = vmatpush3.bf16.msra.mxu0 %v1685_v2  ;;  %1621 = vmatpush3.bf16.msra.mxu1 %v1685_v2  ;;  %v1703_v19 = vld [vmem:[#allocation4 + $0x60] sm:$0xff]   ;;  %v1706_v23 = vld [vmem:[#allocation4 + $0x78] sm:$0xff]   ;;  %v1708_v25 = vld [vmem:[#allocation4 + $0x88] sm:$0xff]   ;;  %s2199_s20 = scalar_lea.vmem %s2245_s3, %s1257_s5 }
  0x58   : > { %1396 = vmatprep.subr.bf16.mxu0 %v1833_v0  ;;  %1614 = vmatprep.subr.bf16.mxu1 %v1833_v0  ;;  %v1695_v21 = vld [vmem:[%s1980_s4 + $0x18] sm:$0xff]   ;;  %v1709_v26 = vld [vmem:[#allocation4 + $0x90] sm:$0xff]   ;;  %v1710_v27 = vld [vmem:[#allocation4 + $0x98] sm:$0xff]  }
  0x59   : > { %v1707_v24 = vld [vmem:[#allocation4 + $0x80] sm:$0xff]   ;;  %v1712_v29 = vld [vmem:[#allocation4 + $0xa8] sm:$0xff]   ;;  %v2050_v30 = vld [vmem:[%s2244_s2] ss:$0 sm:$0xff] }
  0x5a   : > { %v1711_v28 = vld [vmem:[#allocation4 + $0xa0] sm:$0xff]  }
  0x5b   : > { %1397 = vmatpush3.bf16.msra.mxu0 %v1686_v3  ;;  %1622 = vmatpush3.bf16.msra.mxu1 %v1686_v3 }
  0x5c   : > { %1398 = vmatprep.subr.bf16.mxu0 %v1833_v0  ;;  %1615 = vmatprep.subr.bf16.mxu1 %v1833_v0 }
  0x5f   : > { %1399 = vmatpush3.bf16.msra.mxu0 %v1687_v4  ;;  %1623 = vmatpush3.bf16.msra.mxu1 %v1687_v4 }
  0x60   : > { %1400 = vmatprep.subr.bf16.mxu0 %v1833_v0  ;;  %1616 = vmatprep.subr.bf16.mxu1 %v1833_v0 }
  0x63   : > { %1401 = vmatpush3.bf16.msra.mxu0 %v1688_v5  ;;  %1624 = vmatpush3.bf16.msra.mxu1 %v1688_v5 }
  0x64   : > { %1402 = vmatprep.subr.bf16.mxu0 %v1833_v0  ;;  %1617 = vmatprep.subr.bf16.mxu1 %v1833_v0 }
  0x67   : > { %1403 = vmatpush3.bf16.msra.mxu0 %v1689_v6  ;;  %1625 = vmatpush3.bf16.msra.mxu1 %v1689_v6 }
  0x68   : > { %1404 = vmatprep.subr.bf16.mxu0 %v1833_v0  ;;  %1618 = vmatprep.subr.bf16.mxu1 %v1833_v0 }
  0x6b   : > { %1405 = vmatpush3.bf16.msra.mxu0 %v1690_v7  ;;  %1626 = vmatpush3.bf16.msra.mxu1 %v1690_v7 }
  0x6c   : > { %1406 = vmatprep.subr.bf16.mxu0 %v1833_v0  ;;  %1619 = vmatprep.subr.bf16.mxu1 %v1833_v0 }
  0x6f   : > { %1407 = vmatpush3.bf16.msra.mxu0 %v1691_v8  ;;  %1627 = vmatpush3.bf16.msra.mxu1 %v1691_v8 }
  0x70   : > { %1436 = vmatprep.subr.bf16.mxu1 %v1833_v0  ;;  %1480 = vmatprep.subr.bf16.mxu0 %v1833_v0 }
  0x72   : > { %1409 = vmatmul.mubr.bf16.vlgmr.msra.gmra.mrb[0].mxu0 %v1692_v9  ;;  %1425 = vmatmul.mubr.bf16.vlgmr.msra.gmra.mrb[0].mxu1 %v1696_v10 }
  0x73   : > { %1412 = vmatprep.mubr.msk.bf16.mxu0 %vm1834_vm0, %v1833_v0  ;;  %1428 = vmatprep.mubr.msk.bf16.mxu1 %vm1834_vm0, %v1833_v0 }
  0x74   : > { %1437 = vmatpush3.bf16.msra.mxu1 %v1699_v11  ;;  %1481 = vmatpush3.bf16.msra.mxu0 %v1707_v24 }
  0x75   : > { %1438 = vmatprep.subr.bf16.mxu1 %v1833_v0  ;;  %1482 = vmatprep.subr.bf16.mxu0 %v1833_v0 }
  0x78   : > { %1439 = vmatpush3.bf16.msra.mxu1 %v1700_v12  ;;  %1483 = vmatpush3.bf16.msra.mxu0 %v1708_v25 }
  0x79   : > { %1440 = vmatprep.subr.bf16.mxu1 %v1833_v0  ;;  %1484 = vmatprep.subr.bf16.mxu0 %v1833_v0 }
  0x7a   : > { %1413 = vmatmul.mubr.bf16.gmra.mrb[4].mxu0 %v1693_v13  ;;  %1429 = vmatmul.mubr.bf16.gmra.mrb[4].mxu1 %v1697_v14 }
  0x7b   : > { %1416 = vmatprep.mubr.msk.bf16.mxu0 %vm1834_vm0, %v1833_v0  ;;  %1432 = vmatprep.mubr.msk.bf16.mxu1 %vm1834_vm0, %v1833_v0 }
  0x7c   : > { %1441 = vmatpush3.bf16.msra.mxu1 %v1701_v15  ;;  %1485 = vmatpush3.bf16.msra.mxu0 %v1709_v26 }
  0x7d   : > { %1442 = vmatprep.subr.bf16.mxu1 %v1833_v0  ;;  %1486 = vmatprep.subr.bf16.mxu0 %v1833_v0 }
  0x80   : > { %1443 = vmatpush3.bf16.msra.mxu1 %v1702_v16  ;;  %1487 = vmatpush3.bf16.msra.mxu0 %v1710_v27 }
  0x81   : > { %1444 = vmatprep.subr.bf16.mxu1 %v1833_v0  ;;  %1488 = vmatprep.subr.bf16.mxu0 %v1833_v0 }
  0x82   : > { %1417 = vmatmul.mubr.bf16.gmra.mrb[8].mxu0 %v1694_v17  ;;  %1433 = vmatmul.mubr.bf16.gmra.mrb[8].mxu1 %v1698_v18 }
  0x83   : > { %1420 = vmatprep.mubr.msk.bf16.mxu0 %vm1834_vm0, %v1833_v0  ;;  %1452 = vmatprep.mubr.msk.bf16.mxu1 %vm1834_vm0, %v1833_v0 }
  0x84   : > { %1445 = vmatpush3.bf16.msra.mxu1 %v1703_v19  ;;  %1489 = vmatpush3.bf16.msra.mxu0 %v1711_v28 }
  0x85   : > { %1446 = vmatprep.subr.bf16.mxu1 %v1833_v0  ;;  %1490 = vmatprep.subr.bf16.mxu0 %v1833_v0 }
  0x88   : > { %1447 = vmatpush3.bf16.msra.mxu1 %v1704_v20  ;;  %1491 = vmatpush3.bf16.msra.mxu0 %v1712_v29 }
  0x89   : > { %1448 = vmatprep.subr.bf16.mxu1 %v1833_v0  ;;  %1492 = vmatprep.subr.bf16.mxu0 %v1833_v0 }
  0x8a   : > { %1421 = vmatmul.mubr.bf16.gmra.mrb[12].mxu0 %v1695_v21 }
  0x8b   : > { %1496 = vmatprep.mubr.msk.bf16.mxu0 %vm1834_vm0, %v1833_v0 }
  0x8c   : > { %1449 = vmatpush3.bf16.msra.mxu1 %v1705_v22 }
  0x8d   : > { %1450 = vmatprep.subr.bf16.mxu1 %v1833_v0 }
  0x90   : > { %1451 = vmatpush3.bf16.msra.mxu1 %v1706_v23 }
  0x91   : > { %1524 = vmatprep.subr.bf16.mxu1 %v1833_v0 }
 0x145   : > { %v370_v31 = vpop.f32.mrb[0].mxu0  ;;  %v402_v32 = vpop.f32.mrb[0].mxu1 }
 0x146   : > { %v371_v33 = vadd.f32 %v2050_v30, %v370_v31  ;;  %v1410_v34 = vpop.f32.mrb[1].mxu0  ;;  %v403_v35 = vadd.f32 %v2050_v30, %v402_v32  ;;  %v1426_v36 = vpop.f32.mrb[1].mxu1  ;;  %v1714_v32 = vld [vmem:[#allocation4 + $0xb8] sm:$0xff]  }
 0x147   : > { %v373_v37 = vpop.f32.mrb[2].mxu0  ;;  %v405_v38 = vpop.f32.mrb[2].mxu1  ;;  %v1716_v34 = vld [vmem:[#allocation4 + $0xc8] sm:$0xff]   ;;  %v1718_v36 = vld [vmem:[#allocation4 + $0xd8] sm:$0xff]  }
 0x148   : > { %v374_v39 = vadd.f32 %v2050_v30, %v373_v37  ;;  %v1411_v40 = vpop.f32.mrb[3].mxu0  ;;  %v433_v41 = vmax.f32 %v403_v35, 0.0  ;;  %v406_v42 = vadd.f32 %v2050_v30, %v405_v38  ;;  %v1427_v43 = vpop.f32.mrb[3].mxu1  ;;  %v425_v44 = vmax.f32 %v371_v33, 0.0  ;;  %v1715_v33 = vld [vmem:[#allocation4 + $0xc0] sm:$0xff]   ;;  %v1717_v35 = vld [vmem:[#allocation4 + $0xd0] sm:$0xff]  }
 0x149   : > { %v1719_v37 = vld [vmem:[#allocation4 + $0xe0] sm:$0xff]   ;;  %v1720_v38 = vld [vmem:[#allocation4 + $0xe8] sm:$0xff]   ;;  %v2092_v40 = vld [vmem:[%s2244_s2 + $0x1] ss:$0 sm:$0xff] }
 0x14a   : > { %v426_v45 = vmax.f32 %v374_v39, 0.0  ;;  %v434_v46 = vmax.f32 %v406_v42, 0.0  ;;  %v1721_v39 = vld [vmem:[#allocation4 + $0xf0] sm:$0xff]  }
 0x14c   : > { %v439_v47 = vpack.c.bf16 %v426_v45, %v425_v44  ;;  %v443_v48 = vpack.c.bf16 %v434_v46, %v433_v41 }
 0x14d   : > { %v378_v49 = vpop.f32.mrb[4].mxu0  ;;  %v410_v50 = vpop.f32.mrb[4].mxu1 }
 0x14e   : > { %v379_v51 = vadd.f32 %v2050_v30, %v378_v49  ;;  %v1414_v52 = vpop.f32.mrb[5].mxu0  ;;  %1453 = vmatmul.mubr.bf16.vlgmr.msra.gmra.mrb[12].mxu1 %v439_v47  ;;  %v411_v53 = vadd.f32 %v2050_v30, %v410_v50  ;;  %v1430_v54 = vpop.f32.mrb[5].mxu1 }
 0x14f   : > { %v381_v55 = vpop.f32.mrb[6].mxu0  ;;  %1456 = vmatprep.mubr.msk.bf16.mxu1 %vm1834_vm0, %v1833_v0  ;;  %v413_v56 = vpop.f32.mrb[6].mxu1  ;;  %1525 = vmatpush3.bf16.msra.mxu1 %v1715_v33 }
 0x150   : > { %v382_v57 = vadd.f32 %v2050_v30, %v381_v55  ;;  %v1415_v58 = vpop.f32.mrb[7].mxu0  ;;  %v435_v59 = vmax.f32 %v411_v53, 0.0  ;;  %v414_v60 = vadd.f32 %v2050_v30, %v413_v56  ;;  %v1431_v61 = vpop.f32.mrb[7].mxu1  ;;  %v427_v62 = vmax.f32 %v379_v51, 0.0  ;;  %1526 = vmatprep.subr.bf16.mxu1 %v1833_v0 }
 0x152   : > { %v428_v63 = vmax.f32 %v382_v57, 0.0  ;;  %v436_v1 = vmax.f32 %v414_v60, 0.0 }
 0x153   : > { %1527 = vmatpush3.bf16.msra.mxu1 %v1716_v34 }
 0x154   : > { %v440_v2 = vpack.c.bf16 %v428_v63, %v427_v62  ;;  %v444_v3 = vpack.c.bf16 %v436_v1, %v435_v59  ;;  %1528 = vmatprep.subr.bf16.mxu1 %v1833_v0 }
 0x155   : > { %v386_v4 = vpop.f32.mrb[8].mxu0  ;;  %v418_v5 = vpop.f32.mrb[8].mxu1 }
 0x156   : > { %v387_v6 = vadd.f32 %v2050_v30, %v386_v4  ;;  %v1418_v7 = vpop.f32.mrb[9].mxu0  ;;  %1457 = vmatmul.mubr.bf16.gmra.mrb[16].mxu1 %v440_v2  ;;  %v419_v8 = vadd.f32 %v2050_v30, %v418_v5  ;;  %v1434_v9 = vpop.f32.mrb[9].mxu1 }
 0x157   : > { %v389_v10 = vpop.f32.mrb[10].mxu0  ;;  %1460 = vmatprep.mubr.msk.bf16.mxu1 %vm1834_vm0, %v1833_v0  ;;  %v421_v11 = vpop.f32.mrb[10].mxu1  ;;  %1529 = vmatpush3.bf16.msra.mxu1 %v1717_v35 }
 0x158   : > { %v390_v12 = vadd.f32 %v2050_v30, %v389_v10  ;;  %v1419_v13 = vpop.f32.mrb[11].mxu0  ;;  %v437_v14 = vmax.f32 %v419_v8, 0.0  ;;  %v422_v15 = vadd.f32 %v2050_v30, %v421_v11  ;;  %v1435_v16 = vpop.f32.mrb[11].mxu1  ;;  %v429_v17 = vmax.f32 %v387_v6, 0.0  ;;  %1530 = vmatprep.subr.bf16.mxu1 %v1833_v0 }
 0x15a   : > { %v430_v18 = vmax.f32 %v390_v12, 0.0  ;;  %v438_v19 = vmax.f32 %v422_v15, 0.0 }
 0x15b   : > { %1531 = vmatpush3.bf16.msra.mxu1 %v1718_v36 }
 0x15c   : > { %v441_v20 = vpack.c.bf16 %v430_v18, %v429_v17  ;;  %v445_v21 = vpack.c.bf16 %v438_v19, %v437_v14  ;;  %1532 = vmatprep.subr.bf16.mxu1 %v1833_v0 }
 0x15d   : > { %v394_v22 = vpop.f32.mrb[12].mxu0 }
 0x15e   : > { %v395_v23 = vadd.f32 %v2050_v30, %v394_v22  ;;  %v1422_v24 = vpop.f32.mrb[13].mxu0  ;;  %1461 = vmatmul.mubr.bf16.gmra.mrb[20].mxu1 %v441_v20 }
 0x15f   : > { %v397_v25 = vpop.f32.mrb[14].mxu0  ;;  %1464 = vmatprep.mubr.msk.bf16.mxu1 %vm1834_vm0, %v1833_v0  ;;  %1533 = vmatpush3.bf16.msra.mxu1 %v1719_v37 }
 0x160   : > { %v398_v26 = vadd.f32 %v2050_v30, %v397_v25  ;;  %v1423_v27 = vpop.f32.mrb[15].mxu0  ;;  %v431_v28 = vmax.f32 %v395_v23, 0.0  ;;  %v1713_v30 = vld [vmem:[#allocation4 + $0xb0] sm:$0xff]   ;;  %1534 = vmatprep.subr.bf16.mxu1 %v1833_v0 }
 0x161   : > { %1493 = vmatpush3.bf16.msra.mxu0 %v1713_v30 }
 0x162   : > { %v432_v29 = vmax.f32 %v398_v26, 0.0  ;;  %1494 = vmatprep.subr.bf16.mxu0 %v1833_v0 }
 0x163   : > { %1535 = vmatpush3.bf16.msra.mxu1 %v1720_v38 }
 0x164   : > { %v442_v31 = vpack.c.bf16 %v432_v29, %v431_v28  ;;  %1536 = vmatprep.subr.bf16.mxu1 %v1833_v0 }
 0x165   : > { %1495 = vmatpush3.bf16.msra.mxu0 %v1714_v32 }
 0x166   : > { %1465 = vmatmul.mubr.bf16.gmra.mrb[24].mxu1 %v442_v31  ;;  %1568 = vmatprep.subr.bf16.mxu0 %v1833_v0 }
 0x167   : > { %1468 = vmatprep.mubr.msk.bf16.mxu1 %vm1834_vm0, %v1833_v0  ;;  %1537 = vmatpush3.bf16.msra.mxu1 %v1721_v39 }
 0x168   : > { %1538 = vmatprep.subr.bf16.mxu1 %v1833_v0 }
 0x16e   : > { %1469 = vmatmul.mubr.bf16.gmra.mrb[28].mxu1 %v443_v48 }
 0x16f   : > { %1472 = vmatprep.mubr.msk.bf16.mxu1 %vm1834_vm0, %v1833_v0 }
 0x176   : > { %1473 = vmatmul.mubr.bf16.gmra.mrb[32].mxu1 %v444_v3 }
 0x177   : > { %1476 = vmatprep.mubr.msk.bf16.mxu1 %vm1834_vm0, %v1833_v0 }
 0x17e   : > { %1477 = vmatmul.mubr.bf16.gmra.mrb[36].mxu1 %v445_v21 }
 0x17f   : > { %1540 = vmatprep.mubr.msk.bf16.mxu1 %vm1834_vm0, %v1833_v0 }
 0x221   : > { %v553_v41 = vpop.f32.mrb[12].mxu1 }
 0x222   : > { %v554_v42 = vadd.f32 %v2092_v40, %v553_v41  ;;  %v1454_v43 = vpop.f32.mrb[13].mxu1 }
 0x223   : > { %v556_v44 = vpop.f32.mrb[14].mxu1  ;;  %v1723_v43 = vld [vmem:[#allocation4 + $0x100] sm:$0xff]  }
 0x224   : > { %v557_v45 = vadd.f32 %v2092_v40, %v556_v44  ;;  %v1455_v46 = vpop.f32.mrb[15].mxu1  ;;  %v608_v47 = vmax.f32 %v554_v42, 0.0  ;;  %v1722_v42 = vld [vmem:[#allocation4 + $0xf8] sm:$0xff]   ;;  %v1724_v44 = vld [vmem:[#allocation4 + $0x108] sm:$0xff]  }
 0x225   : > { %1539 = vmatpush3.bf16.msra.mxu1 %v1722_v42  ;;  %v1727_v46 = vld [vmem:[#allocation4 + $0x120] sm:$0xff]  }
 0x226   : > { %v609_v48 = vmax.f32 %v557_v45, 0.0  ;;  %v1725_v45 = vld [vmem:[#allocation4 + $0x110] sm:$0xff]  }
 0x228   : > { %v622_v49 = vpack.c.bf16 %v609_v48, %v608_v47  ;;  %v1728_v47 = vld [vmem:[#allocation4 + $0x128] sm:$0xff]   ;;  %v1729_v48 = vld [vmem:[#allocation4 + $0x130] sm:$0xff]  }
 0x229   : > { %v561_v50 = vpop.f32.mrb[16].mxu1 }
 0x22a   : > { %v562_v51 = vadd.f32 %v2092_v40, %v561_v50  ;;  %v1458_v52 = vpop.f32.mrb[17].mxu1  ;;  %1497 = vmatmul.mubr.bf16.vlgmr.msra.gmra.mrb[16].mxu0 %v622_v49  ;;  %v2132_v49 = vld [vmem:[%s2244_s2 + $0x2] ss:$0 sm:$0xff] }
 0x22b   : > { %v564_v53 = vpop.f32.mrb[18].mxu1  ;;  %1500 = vmatprep.mubr.msk.bf16.mxu0 %vm1834_vm0, %v1833_v0  ;;  %1569 = vmatpush3.bf16.msra.mxu0 %v1723_v43 }
 0x22c   : > { %v565_v54 = vadd.f32 %v2092_v40, %v564_v53  ;;  %v1459_v55 = vpop.f32.mrb[19].mxu1  ;;  %v610_v56 = vmax.f32 %v562_v51, 0.0  ;;  %1570 = vmatprep.subr.bf16.mxu0 %v1833_v0 }
 0x22e   : > { %v611_v57 = vmax.f32 %v565_v54, 0.0 }
 0x22f   : > { %1571 = vmatpush3.bf16.msra.mxu0 %v1724_v44 }
 0x230   : > { %v623_v58 = vpack.c.bf16 %v611_v57, %v610_v56  ;;  %1572 = vmatprep.subr.bf16.mxu0 %v1833_v0 }
 0x231   : > { %v569_v59 = vpop.f32.mrb[20].mxu1 }
 0x232   : > { %v570_v60 = vadd.f32 %v2092_v40, %v569_v59  ;;  %v1462_v61 = vpop.f32.mrb[21].mxu1  ;;  %1501 = vmatmul.mubr.bf16.gmra.mrb[20].mxu0 %v623_v58 }
 0x233   : > { %v572_v62 = vpop.f32.mrb[22].mxu1  ;;  %1504 = vmatprep.mubr.msk.bf16.mxu0 %vm1834_vm0, %v1833_v0  ;;  %1573 = vmatpush3.bf16.msra.mxu0 %v1725_v45 }
 0x234   : > { %v573_v63 = vadd.f32 %v2092_v40, %v572_v62  ;;  %v1463_v1 = vpop.f32.mrb[23].mxu1  ;;  %v612_v2 = vmax.f32 %v570_v60, 0.0  ;;  %1574 = vmatprep.subr.bf16.mxu0 %v1833_v0 }
 0x236   : > { %v613_v3 = vmax.f32 %v573_v63, 0.0 }
 0x238   : > { %v624_v4 = vpack.c.bf16 %v613_v3, %v612_v2 }
 0x239   : > { %v577_v5 = vpop.f32.mrb[24].mxu1 }
 0x23a   : > { %v578_v6 = vadd.f32 %v2092_v40, %v577_v5  ;;  %v1466_v7 = vpop.f32.mrb[25].mxu1  ;;  %1505 = vmatmul.mubr.bf16.gmra.mrb[24].mxu0 %v624_v4 }
 0x23b   : > { %v580_v8 = vpop.f32.mrb[26].mxu1  ;;  %1508 = vmatprep.mubr.msk.bf16.mxu0 %vm1834_vm0, %v1833_v0 }
 0x23c   : > { %v581_v9 = vadd.f32 %v2092_v40, %v580_v8  ;;  %v1467_v10 = vpop.f32.mrb[27].mxu1  ;;  %v614_v11 = vmax.f32 %v578_v6, 0.0 }
 0x23e   : > { %v615_v12 = vmax.f32 %v581_v9, 0.0 }
 0x240   : > { %v625_v13 = vpack.c.bf16 %v615_v12, %v614_v11 }
 0x241   : > { %v585_v14 = vpop.f32.mrb[28].mxu1 }
 0x242   : > { %v586_v15 = vadd.f32 %v2092_v40, %v585_v14  ;;  %v1470_v16 = vpop.f32.mrb[29].mxu1  ;;  %1509 = vmatmul.mubr.bf16.gmra.mrb[28].mxu0 %v625_v13 }
 0x243   : > { %v588_v17 = vpop.f32.mrb[30].mxu1  ;;  %1512 = vmatprep.mubr.msk.bf16.mxu0 %vm1834_vm0, %v1833_v0 }
 0x244   : > { %v589_v18 = vadd.f32 %v2092_v40, %v588_v17  ;;  %v1471_v19 = vpop.f32.mrb[31].mxu1  ;;  %v616_v20 = vmax.f32 %v586_v15, 0.0 }
 0x246   : > { %v617_v21 = vmax.f32 %v589_v18, 0.0 }
 0x248   : > { %v626_v22 = vpack.c.bf16 %v617_v21, %v616_v20 }
 0x249   : > { %v593_v23 = vpop.f32.mrb[32].mxu1 }
 0x24a   : > { %v594_v24 = vadd.f32 %v2092_v40, %v593_v23  ;;  %v1474_v25 = vpop.f32.mrb[33].mxu1  ;;  %1513 = vmatmul.mubr.bf16.gmra.mrb[32].mxu0 %v626_v22 }
 0x24b   : > { %v596_v26 = vpop.f32.mrb[34].mxu1  ;;  %1516 = vmatprep.mubr.msk.bf16.mxu0 %vm1834_vm0, %v1833_v0 }
 0x24c   : > { %v597_v27 = vadd.f32 %v2092_v40, %v596_v26  ;;  %v1475_v28 = vpop.f32.mrb[35].mxu1  ;;  %v618_v29 = vmax.f32 %v594_v24, 0.0 }
 0x24e   : > { %v619_v31 = vmax.f32 %v597_v27, 0.0 }
 0x250   : > { %v627_v30 = vpack.c.bf16 %v619_v31, %v618_v29 }
 0x251   : > { %v601_v32 = vpop.f32.mrb[36].mxu1 }
 0x252   : > { %v602_v33 = vadd.f32 %v2092_v40, %v601_v32  ;;  %v1478_v34 = vpop.f32.mrb[37].mxu1  ;;  %1517 = vmatmul.mubr.bf16.gmra.mrb[36].mxu0 %v627_v30 }
 0x253   : > { %v604_v35 = vpop.f32.mrb[38].mxu1  ;;  %1520 = vmatprep.mubr.msk.bf16.mxu0 %vm1834_vm0, %v1833_v0 }
 0x254   : > { %v605_v36 = vadd.f32 %v2092_v40, %v604_v35  ;;  %v1479_v37 = vpop.f32.mrb[39].mxu1  ;;  %v620_v38 = vmax.f32 %v602_v33, 0.0  ;;  %v1726_v40 = vld [vmem:[#allocation4 + $0x118] sm:$0xff]  }
 0x255   : > { %1575 = vmatpush3.bf16.msra.mxu0 %v1726_v40 }
 0x256   : > { %v621_v39 = vmax.f32 %v605_v36, 0.0  ;;  %1576 = vmatprep.subr.bf16.mxu0 %v1833_v0 }
 0x258   : > { %v628_v41 = vpack.c.bf16 %v621_v39, %v620_v38 }
 0x259   : > { %1577 = vmatpush3.bf16.msra.mxu0 %v1727_v46 }
 0x25a   : > { %1521 = vmatmul.mubr.bf16.gmra.mrb[40].mxu0 %v628_v41  ;;  %1578 = vmatprep.subr.bf16.mxu0 %v1833_v0 }
 0x25b   : > { %1584 = vmatprep.mubr.msk.bf16.mxu0 %vm1834_vm0, %v1833_v0 }
 0x25d   : > { %1579 = vmatpush3.bf16.msra.mxu0 %v1728_v47 }
 0x25e   : > { %1580 = vmatprep.subr.bf16.mxu0 %v1833_v0 }
 0x261   : > { %1581 = vmatpush3.bf16.msra.mxu0 %v1729_v48 }
 0x262   : > { %1582 = vmatprep.subr.bf16.mxu0 %v1833_v0 }
 0x2fd   : > { %v736_v50 = vpop.f32.mrb[16].mxu0 }
 0x2fe   : > { %v737_v51 = vadd.f32 %v2132_v49, %v736_v50  ;;  %v1498_v52 = vpop.f32.mrb[17].mxu0 }
 0x2ff   : > { %v739_v53 = vpop.f32.mrb[18].mxu0  ;;  %v2163_v52 = vld [vmem:[%s2244_s2 + $0x3] ss:$0 sm:$0xff] }
 0x300   : > { %v740_v54 = vadd.f32 %v2132_v49, %v739_v53  ;;  %v1499_v55 = vpop.f32.mrb[19].mxu0  ;;  %v791_v56 = vmax.f32 %v737_v51, 0.0  ;;  %v1730_v51 = vld [vmem:[#allocation4 + $0x138] sm:$0xff]  }
 0x301   : > { %1583 = vmatpush3.bf16.msra.mxu0 %v1730_v51 }
 0x302   : > { %v792_v57 = vmax.f32 %v740_v54, 0.0 }
 0x304   : > { %v805_v58 = vpack.c.bf16 %v792_v57, %v791_v56 }
 0x305   : > { %v744_v59 = vpop.f32.mrb[20].mxu0 }
 0x306   : > { %v745_v60 = vadd.f32 %v2132_v49, %v744_v59  ;;  %v1502_v61 = vpop.f32.mrb[21].mxu0  ;;  %1541 = vmatmul.mubr.bf16.vlgmr.msra.gmra.mrb[40].mxu1 %v805_v58 }
 0x307   : > { %v747_v62 = vpop.f32.mrb[22].mxu0  ;;  %1544 = vmatprep.mubr.msk.bf16.mxu1 %vm1834_vm0, %v1833_v0 }
 0x308   : > { %v748_v63 = vadd.f32 %v2132_v49, %v747_v62  ;;  %v1503_v1 = vpop.f32.mrb[23].mxu0  ;;  %v793_v2 = vmax.f32 %v745_v60, 0.0 }
 0x30a   : > { %v794_v3 = vmax.f32 %v748_v63, 0.0 }
 0x30c   : > { %v806_v4 = vpack.c.bf16 %v794_v3, %v793_v2 }
 0x30d   : > { %v752_v5 = vpop.f32.mrb[24].mxu0 }
 0x30e   : > { %v753_v6 = vadd.f32 %v2132_v49, %v752_v5  ;;  %v1506_v7 = vpop.f32.mrb[25].mxu0  ;;  %1545 = vmatmul.mubr.bf16.gmra.mrb[44].mxu1 %v806_v4 }
 0x30f   : > { %v755_v8 = vpop.f32.mrb[26].mxu0  ;;  %1548 = vmatprep.mubr.msk.bf16.mxu1 %vm1834_vm0, %v1833_v0 }
 0x310   : > { %v756_v9 = vadd.f32 %v2132_v49, %v755_v8  ;;  %v1507_v10 = vpop.f32.mrb[27].mxu0  ;;  %v795_v11 = vmax.f32 %v753_v6, 0.0 }
 0x312   : > { %v796_v12 = vmax.f32 %v756_v9, 0.0 }
 0x314   : > { %v807_v13 = vpack.c.bf16 %v796_v12, %v795_v11 }
 0x315   : > { %v760_v14 = vpop.f32.mrb[28].mxu0 }
 0x316   : > { %v761_v15 = vadd.f32 %v2132_v49, %v760_v14  ;;  %v1510_v16 = vpop.f32.mrb[29].mxu0  ;;  %1549 = vmatmul.mubr.bf16.gmra.mrb[48].mxu1 %v807_v13 }
 0x317   : > { %v763_v17 = vpop.f32.mrb[30].mxu0  ;;  %1552 = vmatprep.mubr.msk.bf16.mxu1 %vm1834_vm0, %v1833_v0 }
 0x318   : > { %v764_v18 = vadd.f32 %v2132_v49, %v763_v17  ;;  %v1511_v19 = vpop.f32.mrb[31].mxu0  ;;  %v797_v20 = vmax.f32 %v761_v15, 0.0 }
 0x31a   : > { %v798_v21 = vmax.f32 %v764_v18, 0.0 }
 0x31c   : > { %v808_v22 = vpack.c.bf16 %v798_v21, %v797_v20 }
 0x31d   : > { %v768_v23 = vpop.f32.mrb[32].mxu0 }
 0x31e   : > { %v769_v24 = vadd.f32 %v2132_v49, %v768_v23  ;;  %v1514_v25 = vpop.f32.mrb[33].mxu0  ;;  %1553 = vmatmul.mubr.bf16.gmra.mrb[52].mxu1 %v808_v22 }
 0x31f   : > { %v771_v26 = vpop.f32.mrb[34].mxu0  ;;  %1556 = vmatprep.mubr.msk.bf16.mxu1 %vm1834_vm0, %v1833_v0 }
 0x320   : > { %v772_v27 = vadd.f32 %v2132_v49, %v771_v26  ;;  %v1515_v28 = vpop.f32.mrb[35].mxu0  ;;  %v799_v29 = vmax.f32 %v769_v24, 0.0 }
 0x322   : > { %v800_v31 = vmax.f32 %v772_v27, 0.0 }
 0x324   : > { %v809_v30 = vpack.c.bf16 %v800_v31, %v799_v29 }
 0x325   : > { %v776_v32 = vpop.f32.mrb[36].mxu0 }
 0x326   : > { %v777_v33 = vadd.f32 %v2132_v49, %v776_v32  ;;  %v1518_v34 = vpop.f32.mrb[37].mxu0  ;;  %1557 = vmatmul.mubr.bf16.gmra.mrb[56].mxu1 %v809_v30 }
 0x327   : > { %v779_v35 = vpop.f32.mrb[38].mxu0  ;;  %1560 = vmatprep.mubr.msk.bf16.mxu1 %vm1834_vm0, %v1833_v0 }
 0x328   : > { %v780_v36 = vadd.f32 %v2132_v49, %v779_v35  ;;  %v1519_v37 = vpop.f32.mrb[39].mxu0  ;;  %v801_v38 = vmax.f32 %v777_v33, 0.0 }
 0x32a   : > { %v802_v39 = vmax.f32 %v780_v36, 0.0 }
 0x32c   : > { %v810_v41 = vpack.c.bf16 %v802_v39, %v801_v38 }
 0x32d   : > { %v784_v42 = vpop.f32.mrb[40].mxu0 }
 0x32e   : > { %v785_v43 = vadd.f32 %v2132_v49, %v784_v42  ;;  %v1522_v44 = vpop.f32.mrb[41].mxu0  ;;  %1561 = vmatmul.mubr.bf16.gmra.mrb[60].mxu1 %v810_v41 }
 0x32f   : > { %v787_v45 = vpop.f32.mrb[42].mxu0  ;;  %1564 = vmatprep.mubr.msk.bf16.mxu1 %vm1834_vm0, %v1833_v0 }
 0x330   : > { %v788_v40 = vadd.f32 %v2132_v49, %v787_v45  ;;  %v1523_v46 = vpop.f32.mrb[43].mxu0  ;;  %v803_v47 = vmax.f32 %v785_v43, 0.0 }
 0x332   : > { %v804_v48 = vmax.f32 %v788_v40, 0.0 }
 0x334   : > { %v811_v50 = vpack.c.bf16 %v804_v48, %v803_v47 }
 0x336   : > { %1565 = vmatmul.mubr.bf16.gmra.mrb[64].mxu1 %v811_v50 }
 0x3d9   : > { %v919_v53 = vpop.f32.mrb[40].mxu1 }
 0x3da   : > { %v920_v54 = vadd.f32 %v2163_v52, %v919_v53  ;;  %v1542_v55 = vpop.f32.mrb[41].mxu1 }
 0x3db   : > { %v922_v56 = vpop.f32.mrb[42].mxu1 }
 0x3dc   : > { %v923_v57 = vadd.f32 %v2163_v52, %v922_v56  ;;  %v1543_v49 = vpop.f32.mrb[43].mxu1  ;;  %v974_v58 = vmax.f32 %v920_v54, 0.0  ;;  %v1305_v54 = vld [vmem:[%s2244_s2 + $0x4] ss:$0 sm:$0xff] }
 0x3de   : > { %v975_v59 = vmax.f32 %v923_v57, 0.0 }
 0x3e0   : > { %v988_v60 = vpack.c.bf16 %v975_v59, %v974_v58 }
 0x3e1   : > { %v927_v61 = vpop.f32.mrb[44].mxu1 }
 0x3e2   : > { %v928_v62 = vadd.f32 %v2163_v52, %v927_v61  ;;  %v1546_v63 = vpop.f32.mrb[45].mxu1  ;;  %1585 = vmatmul.mubr.bf16.vlgmr.msra.gmra.mrb[44].mxu0 %v988_v60 }
 0x3e3   : > { %v930_v1 = vpop.f32.mrb[46].mxu1  ;;  %1588 = vmatprep.mubr.msk.bf16.mxu0 %vm1834_vm0, %v1833_v0 }
 0x3e4   : > { %v931_v2 = vadd.f32 %v2163_v52, %v930_v1  ;;  %v1547_v3 = vpop.f32.mrb[47].mxu1  ;;  %v976_v4 = vmax.f32 %v928_v62, 0.0 }
 0x3e6   : > { %v977_v5 = vmax.f32 %v931_v2, 0.0 }
 0x3e8   : > { %v989_v6 = vpack.c.bf16 %v977_v5, %v976_v4 }
 0x3e9   : > { %v935_v7 = vpop.f32.mrb[48].mxu1 }
 0x3ea   : > { %v936_v8 = vadd.f32 %v2163_v52, %v935_v7  ;;  %v1550_v9 = vpop.f32.mrb[49].mxu1  ;;  %1589 = vmatmul.mubr.bf16.gmra.mrb[48].mxu0 %v989_v6 }
 0x3eb   : > { %v938_v10 = vpop.f32.mrb[50].mxu1  ;;  %1592 = vmatprep.mubr.msk.bf16.mxu0 %vm1834_vm0, %v1833_v0 }
 0x3ec   : > { %v939_v11 = vadd.f32 %v2163_v52, %v938_v10  ;;  %v1551_v12 = vpop.f32.mrb[51].mxu1  ;;  %v978_v13 = vmax.f32 %v936_v8, 0.0 }
 0x3ee   : > { %v979_v14 = vmax.f32 %v939_v11, 0.0 }
 0x3f0   : > { %v990_v15 = vpack.c.bf16 %v979_v14, %v978_v13 }
 0x3f1   : > { %v943_v16 = vpop.f32.mrb[52].mxu1 }
 0x3f2   : > { %v944_v17 = vadd.f32 %v2163_v52, %v943_v16  ;;  %v1554_v18 = vpop.f32.mrb[53].mxu1  ;;  %1593 = vmatmul.mubr.bf16.gmra.mrb[52].mxu0 %v990_v15 }
 0x3f3   : > { %v946_v19 = vpop.f32.mrb[54].mxu1  ;;  %1596 = vmatprep.mubr.msk.bf16.mxu0 %vm1834_vm0, %v1833_v0 }
 0x3f4   : > { %v947_v20 = vadd.f32 %v2163_v52, %v946_v19  ;;  %v1555_v21 = vpop.f32.mrb[55].mxu1  ;;  %v980_v22 = vmax.f32 %v944_v17, 0.0 }
 0x3f6   : > { %v981_v23 = vmax.f32 %v947_v20, 0.0 }
 0x3f8   : > { %v991_v24 = vpack.c.bf16 %v981_v23, %v980_v22 }
 0x3f9   : > { %v951_v25 = vpop.f32.mrb[56].mxu1 }
 0x3fa   : > { %v952_v26 = vadd.f32 %v2163_v52, %v951_v25  ;;  %v1558_v27 = vpop.f32.mrb[57].mxu1  ;;  %1597 = vmatmul.mubr.bf16.gmra.mrb[56].mxu0 %v991_v24 }
 0x3fb   : > { %v954_v28 = vpop.f32.mrb[58].mxu1  ;;  %1600 = vmatprep.mubr.msk.bf16.mxu0 %vm1834_vm0, %v1833_v0 }
 0x3fc   : > { %v955_v29 = vadd.f32 %v2163_v52, %v954_v28  ;;  %v1559_v31 = vpop.f32.mrb[59].mxu1  ;;  %v982_v30 = vmax.f32 %v952_v26, 0.0 }
 0x3fe   : > { %v983_v32 = vmax.f32 %v955_v29, 0.0 }
 0x400   : > { %v992_v33 = vpack.c.bf16 %v983_v32, %v982_v30 }
 0x401   : > { %v959_v34 = vpop.f32.mrb[60].mxu1 }
 0x402   : > { %v960_v35 = vadd.f32 %v2163_v52, %v959_v34  ;;  %v1562_v36 = vpop.f32.mrb[61].mxu1  ;;  %1601 = vmatmul.mubr.bf16.gmra.mrb[60].mxu0 %v992_v33 }
 0x403   : > { %v962_v37 = vpop.f32.mrb[62].mxu1  ;;  %1604 = vmatprep.mubr.msk.bf16.mxu0 %vm1834_vm0, %v1833_v0 }
 0x404   : > { %v963_v38 = vadd.f32 %v2163_v52, %v962_v37  ;;  %v1563_v39 = vpop.f32.mrb[63].mxu1  ;;  %v984_v41 = vmax.f32 %v960_v35, 0.0 }
 0x406   : > { %v985_v42 = vmax.f32 %v963_v38, 0.0 }
 0x408   : > { %v993_v43 = vpack.c.bf16 %v985_v42, %v984_v41 }
 0x409   : > { %v967_v44 = vpop.f32.mrb[64].mxu1 }
 0x40a   : > { %v968_v45 = vadd.f32 %v2163_v52, %v967_v44  ;;  %v1566_v40 = vpop.f32.mrb[65].mxu1  ;;  %1605 = vmatmul.mubr.bf16.gmra.mrb[64].mxu0 %v993_v43 }
 0x40b   : > { %v970_v46 = vpop.f32.mrb[66].mxu1  ;;  %1608 = vmatprep.mubr.msk.bf16.mxu0 %vm1834_vm0, %v1833_v0 }
 0x40c   : > { %v971_v47 = vadd.f32 %v2163_v52, %v970_v46  ;;  %v1567_v48 = vpop.f32.mrb[67].mxu1  ;;  %v986_v50 = vmax.f32 %v968_v45, 0.0 }
 0x40e   : > { %v987_v51 = vmax.f32 %v971_v47, 0.0 }
 0x410   : > { %v994_v53 = vpack.c.bf16 %v987_v51, %v986_v50 }
 0x412   : > { %1609 = vmatmul.mubr.bf16.gmra.mrb[68].mxu0 %v994_v53 }
 0x4b5   : > { %v1102_v0 = vpop.f32.mrb[44].mxu0 }
 0x4b6   : > { %v1103_v52 = vadd.f32 %v1305_v54, %v1102_v0  ;;  %v1586_v55 = vpop.f32.mrb[45].mxu0 }
 0x4b7   : > { %v1105_v56 = vpop.f32.mrb[46].mxu0 }
 0x4b8   : > { %1158 = vst.msk [vmem:[%s2199_s20] sm:$0xff] %vm1157_vm1, %v1103_v52  ;;  %v1106_v57 = vadd.f32 %v1305_v54, %v1105_v56  ;;  %v1587_v49 = vpop.f32.mrb[47].mxu0 }
 0x4ba   : > { %1159 = vst.msk [vmem:[%s2199_s20 + $0x8] sm:$0xff] %vm1157_vm1, %v1106_v57 }
 0x4bd   : > { %v1110_v58 = vpop.f32.mrb[48].mxu0 }
 0x4be   : > { %v1111_v59 = vadd.f32 %v1305_v54, %v1110_v58  ;;  %v1590_v60 = vpop.f32.mrb[49].mxu0 }
 0x4bf   : > { %v1113_v61 = vpop.f32.mrb[50].mxu0 }
 0x4c0   : > { %1160 = vst.msk [vmem:[%s2199_s20 + $0x10] sm:$0xff] %vm1157_vm1, %v1111_v59  ;;  %v1114_v62 = vadd.f32 %v1305_v54, %v1113_v61  ;;  %v1591_v63 = vpop.f32.mrb[51].mxu0 }
 0x4c2   : > { %1161 = vst.msk [vmem:[%s2199_s20 + $0x18] sm:$0xff] %vm1157_vm1, %v1114_v62 }
 0x4c5   : > { %v1118_v1 = vpop.f32.mrb[52].mxu0 }
 0x4c6   : > { %v1119_v2 = vadd.f32 %v1305_v54, %v1118_v1  ;;  %v1594_v3 = vpop.f32.mrb[53].mxu0 }
 0x4c7   : > { %v1121_v4 = vpop.f32.mrb[54].mxu0 }
 0x4c8   : > { %1162 = vst.msk [vmem:[%s2199_s20 + $0x20] sm:$0xff] %vm1157_vm1, %v1119_v2  ;;  %v1122_v5 = vadd.f32 %v1305_v54, %v1121_v4  ;;  %v1595_v6 = vpop.f32.mrb[55].mxu0 }
 0x4ca   : > { %1163 = vst.msk [vmem:[%s2199_s20 + $0x28] sm:$0xff] %vm1157_vm1, %v1122_v5 }
 0x4cd   : > { %v1126_v7 = vpop.f32.mrb[56].mxu0 }
 0x4ce   : > { %v1127_v8 = vadd.f32 %v1305_v54, %v1126_v7  ;;  %v1598_v9 = vpop.f32.mrb[57].mxu0 }
 0x4cf   : > { %v1129_v10 = vpop.f32.mrb[58].mxu0 }
 0x4d0   : > { %1164 = vst.msk [vmem:[%s2199_s20 + $0x30] sm:$0xff] %vm1157_vm1, %v1127_v8  ;;  %v1130_v11 = vadd.f32 %v1305_v54, %v1129_v10  ;;  %v1599_v12 = vpop.f32.mrb[59].mxu0 }
 0x4d2   : > { %1165 = vst.msk [vmem:[%s2199_s20 + $0x38] sm:$0xff] %vm1157_vm1, %v1130_v11 }
 0x4d5   : > { %v1134_v13 = vpop.f32.mrb[60].mxu0 }
 0x4d6   : > { %v1135_v14 = vadd.f32 %v1305_v54, %v1134_v13  ;;  %v1602_v15 = vpop.f32.mrb[61].mxu0 }
 0x4d7   : > { %v1137_v16 = vpop.f32.mrb[62].mxu0 }
 0x4d8   : > { %1166 = vst.msk [vmem:[%s2199_s20 + $0x40] sm:$0xff] %vm1157_vm1, %v1135_v14  ;;  %v1138_v17 = vadd.f32 %v1305_v54, %v1137_v16  ;;  %v1603_v18 = vpop.f32.mrb[63].mxu0 }
 0x4da   : > { %1167 = vst.msk [vmem:[%s2199_s20 + $0x48] sm:$0xff] %vm1157_vm1, %v1138_v17 }
 0x4dd   : > { %v1142_v19 = vpop.f32.mrb[64].mxu0 }
 0x4de   : > { %v1143_v20 = vadd.f32 %v1305_v54, %v1142_v19  ;;  %v1606_v21 = vpop.f32.mrb[65].mxu0 }
 0x4df   : > { %v1145_v22 = vpop.f32.mrb[66].mxu0 }
 0x4e0   : > { %1168 = vst.msk [vmem:[%s2199_s20 + $0x50] sm:$0xff] %vm1157_vm1, %v1143_v20  ;;  %v1146_v23 = vadd.f32 %v1305_v54, %v1145_v22  ;;  %v1607_v24 = vpop.f32.mrb[67].mxu0 }
 0x4e2   : > { %1169 = vst.msk [vmem:[%s2199_s20 + $0x58] sm:$0xff] %vm1157_vm1, %v1146_v23 }
 0x4e5   : > { %v1150_v25 = vpop.f32.mrb[68].mxu0 }
 0x4e6   : > { %v1151_v26 = vadd.f32 %v1305_v54, %v1150_v25  ;;  %v1610_v27 = vpop.f32.mrb[69].mxu0 }
 0x4e7   : > { %v1153_v28 = vpop.f32.mrb[70].mxu0 }
 0x4e8   : > { %1170 = vst.msk [vmem:[%s2199_s20 + $0x60] sm:$0xff] %vm1157_vm1, %v1151_v26  ;;  %v1154_v29 = vadd.f32 %v1305_v54, %v1153_v28  ;;  %v1611_v31 = vpop.f32.mrb[71].mxu0 }
 0x4ea   : > { %1171 = vst.msk [vmem:[%s2199_s20 + $0x68] sm:$0xff] %vm1157_vm1, %v1154_v29 }
 0x4eb PF: > { %p14_p6 = scmp.ge.s32.totalorder %s1902_s23, 4   ;;  %s2258_s12 = smov %s1819_s13 }
 0x4ec   : > { %s2259_s13 = smov %s1823_s14  ;;  %s2260_s14 = smov %s1931_s11 }
 0x4ed   : > { %s2261_s15 = smov %s1902_s23  ;;  %16 = sbr.rel (!%p14_p6) target bundleno = 4 (0x4), region = 84 }
 0x4f4   :  { %1194 = vsyncpa [#allocation3], 1 }
 0x4f5   :  { %1196 = vsyncpa [#allocation3 + $0x1], 1 }
 0x4f6   :  { %1197 = vsyncpa [#allocation5], 1 }

</bundles_post_ra>
